<compile_context>
chip_gen: v7x
topology: tpu7x:2x2x1
jax: 0.10.0
libtpu: 0.0.40
codegen_flags: <defaults>
</compile_context>

<pallas_src>
import jax
import jax.numpy as jnp
from jax.experimental import pallas as pl
from jax.experimental.pallas import tpu as pltpu


def _round_up(v, m):
    return ((v + m - 1) // m) * m


def _split_attn_kernel(base_ref, pos_ref, x_ref, o_ref, m_sc, l_sc, acc_sc):
    # base_ref: (TQ, Dp_aug) f32   pos_ref: (TK, Dp_aug) f32
    # x_ref:    (TK, D_pad) bf16   o_ref:   (TQ, D_pad) f32
    k = pl.program_id(2)

    @pl.when(k == 0)
    def _():
        m_sc[...] = jnp.full(m_sc.shape, -jnp.inf, m_sc.dtype)
        l_sc[...] = jnp.zeros(l_sc.shape, l_sc.dtype)
        acc_sc[...] = jnp.zeros(acc_sc.shape, acc_sc.dtype)

    # dots tile (TQ, TK): base_aug . pos_aug^T.  The key-side -pe_sq/bw rides in a padded
    # feature column (base has -1 there), and the softmax-invariant base_sq term is
    # dropped, so no extra VPU work is needed on the O(TQ*TK) tile besides the softmax.
    dots = jax.lax.dot_general(
        base_ref[...], pos_ref[...], (((1,), (1,)), ((), ())),
        precision=jax.lax.Precision.HIGHEST,          # f32-accurate distances
        preferred_element_type=jnp.float32)

    m_prev = m_sc[...]
    m_new = jnp.maximum(m_prev, jnp.max(dots, axis=-1, keepdims=True))
    alpha = jnp.exp(m_prev - m_new)                    # == 0 at k == 0 (m_prev = -inf)
    e = jnp.exp(dots - m_new)                          # unnormalized weights, f32

    l_sc[...] = alpha * l_sc[...] + jnp.sum(e, axis=-1, keepdims=True)
    acc_sc[...] = alpha * acc_sc[...] + jnp.dot(       # MXU bf16 in, f32 acc
        e.astype(jnp.bfloat16), x_ref[...],
        preferred_element_type=jnp.float32)
    m_sc[...] = m_new

    @pl.when(k == pl.num_programs(2) - 1)
    def _():
        # Normalize after the PV matmul: O(TQ*D) instead of O(TQ*N); EUP approx recip.
        o_ref[...] = (acc_sc[...] * pl.reciprocal(l_sc[...], approx=True)
                      ).astype(o_ref.dtype)


def explicit_split_attention(x, pos_embedding, base_pos_embedding, band_width):
    b, n, d = x.shape
    n_b, dp = base_pos_embedding.shape
    assert n_b == n and pos_embedding.shape == (b, n, dp)
    inv_bw = 1.0 / float(band_width)

    # Lane-dense feature padding (exact: zero columns change neither distances nor attn@x).
    d_pad = _round_up(d, 128)
    dp_aug = _round_up(dp + 1, 128)        # at least one spare column for the folded pe_sq

    # Query-row tiling: pad only the base/query side (extra output rows are sliced away).
    tq = 256 if (n % 256 == 0) else 128    # sweepable: 128/256/512
    n_q_pad = _round_up(n, tq)

    # Key-side j-tiling (flash-style online softmax). Never pad the softmax/key axis.
    tk = n
    for cand in (1024, 512, 256, 128):
        if n % cand == 0:
            tk = cand
            break
    nk = n // tk

    # x: bf16, feature-padded — halves its DMA + VMEM residency.
    x_p = jnp.pad(x.astype(jnp.bfloat16), ((0, 0), (0, 0), (0, d_pad - d)))

    # pos augmented: [pe, pe_sq/bw, 0...]   (computed once in the wrapper, not per tile)
    pos_f32 = pos_embedding.astype(jnp.float32)
    pe_sq = jnp.sum(pos_f32 * pos_f32, axis=-1, keepdims=True) * inv_bw
    pos_aug = jnp.concatenate([pos_f32, pe_sq], axis=-1)
    pos_aug = jnp.pad(pos_aug, ((0, 0), (0, 0), (0, dp_aug - (dp + 1))))

    # base augmented: [2*base/bw, -1, 0...], query rows zero-padded to n_q_pad.
    # Then base_aug . pos_aug^T = (2 base.pe - pe_sq)/bw = dots + base_sq/bw, and base_sq
    # is constant along the softmax axis, so the softmax is unchanged.
    base_scaled = base_pos_embedding.astype(jnp.float32) * (2.0 * inv_bw)
    base_aug = jnp.concatenate(
        [base_scaled, jnp.full((n, 1), -1.0, jnp.float32)], axis=-1)
    base_aug = jnp.pad(base_aug, ((0, n_q_pad - n), (0, dp_aug - (dp + 1))))

    grid = (b, n_q_pad // tq, nk)

    flops = 2 * b * n_q_pad * n * (dp_aug + d_pad)
    bytes_accessed = (4 * n_q_pad * dp_aug + 4 * b * n * dp_aug
                      + 2 * b * n * d_pad + 4 * b * n_q_pad * d_pad)
    cost = pl.CostEstimate(flops=flops, transcendentals=b * n_q_pad * n,
                           bytes_accessed=bytes_accessed)

    # Explicit VMEM budget: double-buffered blocks + scratch + margin, capped so it is
    # safe on every generation (v7x has only 64 MiB per TensorCore).
    block_bytes = (tq * dp_aug * 4          # base tile (f32)
                   + tk * dp_aug * 4        # pos tile (f32)
                   + tk * d_pad * 2         # x tile (bf16)
                   + tq * d_pad * 4)        # out tile (f32)
    scratch_bytes = tq * d_pad * 4 + 2 * tq * 4
    vmem_limit = int(min(max(2 * block_bytes + scratch_bytes + (4 << 20), 32 << 20),
                         56 << 20))

    out = pl.pallas_call(
        _split_attn_kernel,
        out_shape=jax.ShapeDtypeStruct((b, n_q_pad, d_pad), jnp.float32),
        grid_spec=pltpu.PrefetchScalarGridSpec(
            num_scalar_prefetch=0,
            grid=grid,
            in_specs=[
                pl.BlockSpec((tq, dp_aug), lambda bi, i, k: (i, 0)),       # base rows
                pl.BlockSpec((None, tk, dp_aug), lambda bi, i, k: (bi, k, 0)),  # pos keys
                pl.BlockSpec((None, tk, d_pad), lambda bi, i, k: (bi, k, 0)),   # x values
            ],
            out_specs=pl.BlockSpec((None, tq, d_pad), lambda bi, i, k: (bi, i, 0)),
            scratch_shapes=[
                pltpu.VMEM((tq, 1), jnp.float32),       # running max
                pltpu.VMEM((tq, 1), jnp.float32),       # running sum
                pltpu.VMEM((tq, d_pad), jnp.float32),   # running output accumulator
            ],
        ),
        compiler_params=pltpu.CompilerParams(
            dimension_semantics=("parallel", "parallel", "arbitrary"),
            vmem_limit_bytes=vmem_limit),
        cost_estimate=cost,
    )(base_aug, pos_aug, x_p)
    return out[:, :n, :d]


if __name__ == "__main__":
    key = jax.random.PRNGKey(0)
    b, n, dim = 2, 8, 32
    dim_pos = 32
    band_width = 4.0

    k1, k2, k3 = jax.random.split(key, 3)
    x = jax.random.normal(k1, (b, n, dim), dtype=jnp.float32)
    pos_embedding = jax.random.normal(k2, (b, n, dim_pos), dtype=jnp.float32)
    base_pos_embedding = jax.random.normal(k3, (n, dim_pos), dtype=jnp.float32)

    out = explicit_split_attention(x, pos_embedding, base_pos_embedding, band_width)
    out = jax.block_until_ready(out)

    # Pure-JAX reference (mirrors the torch broadcast/reduction exactly).
    diff = pos_embedding[:, None, :, :] - base_pos_embedding[None, :, None, :]  # (b,i,j,d)
    dots_ref = -jnp.sum(diff ** 2, axis=-1) / band_width                        # (b,i,j)
    attn_ref = jax.nn.softmax(dots_ref, axis=-1)
    ref = jnp.einsum("bij,bjd->bid", attn_ref, x)

    assert out.shape == (b, n, dim)
    # bf16 operands on the attn@x matmul + approx reciprocal => ~1e-3-level error.
    assert jnp.allclose(out, ref, atol=1e-2, rtol=1e-2), float(jnp.max(jnp.abs(out - ref)))
    print("KERNEL_OK")
</pallas_src>

<mosaic_0001>
module attributes {stable_mosaic.version = 11 : i64} {
  func.func @_split_attn_kernel(%arg0: i32, %arg1: i32, %arg2: i32, %arg3: memref<128x128xf32, #tpu.memory_space<vmem>>, %arg4: memref<1x8x128xf32, #tpu.memory_space<vmem>>, %arg5: memref<1x8x128xbf16, #tpu.memory_space<vmem>>, %arg6: memref<1x128x128xf32, #tpu.memory_space<vmem>>, %arg7: memref<128x1xf32, #tpu.memory_space<vmem>>, %arg8: memref<128x1xf32, #tpu.memory_space<vmem>>, %arg9: memref<128x128xf32, #tpu.memory_space<vmem>>) attributes {dimension_semantics = [#tpu.dimension_semantics<parallel>, #tpu.dimension_semantics<parallel>, #tpu.dimension_semantics<arbitrary>], iteration_bounds = array<i64: 2, 1, 1>, scalar_prefetch = 0 : i64, scratch_operands = 3 : i64, tpu.core_type = #tpu.core_type<tc>, window_params = [{transform_indices = @transform_0, window_bounds = array<i64: 128, 128>}, {transform_indices = @transform_1, window_bounds = array<i64: 1, 8, 128>}, {transform_indices = @transform_2, window_bounds = array<i64: 1, 8, 128>}, {transform_indices = @transform_3, window_bounds = array<i64: 1, 128, 128>}]} {
    %c0_i32 = arith.constant 0 : i32
    %0 = arith.cmpi eq, %arg2, %c0_i32 : i32
    %1 = arith.extui %0 : i1 to i32
    %c0_i32_0 = arith.constant 0 : i32
    %2 = arith.cmpi ne, %1, %c0_i32_0 : i32
    scf.if %2 {
      %cst_25 = arith.constant 0xFF800000 : f32
      %35 = vector.broadcast %cst_25 : f32 to vector<128x1xf32>
      %c0_26 = arith.constant 0 : index
      %c0_27 = arith.constant 0 : index
      %36 = vector.load %arg7[%c0_26, %c0_27] : memref<128x1xf32, #tpu.memory_space<vmem>>, vector<128x1xf32>
      tpu.vector_store %arg7[%c0_26, %c0_27], %35 {strides = array<i32>} : memref<128x1xf32, #tpu.memory_space<vmem>>, vector<128x1xf32>,
      %cst_28 = arith.constant 0.000000e+00 : f32
      %37 = vector.broadcast %cst_28 : f32 to vector<128x1xf32>
      %c0_29 = arith.constant 0 : index
      %c0_30 = arith.constant 0 : index
      %38 = vector.load %arg8[%c0_29, %c0_30] : memref<128x1xf32, #tpu.memory_space<vmem>>, vector<128x1xf32>
      tpu.vector_store %arg8[%c0_29, %c0_30], %37 {strides = array<i32>} : memref<128x1xf32, #tpu.memory_space<vmem>>, vector<128x1xf32>,
      %cst_31 = arith.constant 0.000000e+00 : f32
      %39 = vector.broadcast %cst_31 : f32 to vector<128x128xf32>
      %c0_32 = arith.constant 0 : index
      %c0_33 = arith.constant 0 : index
      %40 = vector.load %arg9[%c0_32, %c0_33] : memref<128x128xf32, #tpu.memory_space<vmem>>, vector<128x128xf32>
      tpu.vector_store %arg9[%c0_32, %c0_33], %39 {strides = array<i32>} : memref<128x128xf32, #tpu.memory_space<vmem>>, vector<128x128xf32>,
    } else {
    }
    %c0 = arith.constant 0 : index
    %c0_1 = arith.constant 0 : index
    %3 = vector.load %arg3[%c0, %c0_1] : memref<128x128xf32, #tpu.memory_space<vmem>>, vector<128x128xf32>
    %c0_2 = arith.constant 0 : index
    %c0_3 = arith.constant 0 : index
    %c0_4 = arith.constant 0 : index
    %4 = vector.load %arg4[%c0_2, %c0_3, %c0_4] : memref<1x8x128xf32, #tpu.memory_space<vmem>>, vector<1x8x128xf32>
    %5 = vector.shape_cast %4 : vector<1x8x128xf32> to vector<8x128xf32>
    %cst = arith.constant dense<0.000000e+00> : vector<128x8xf32>
    %6 = tpu.matmul %3, %5, %cst {dimension_numbers = #tpu.dot_dimension_numbers<[1], [1], [0], [0], [0, 0, 1, 0], [], []>, precision = #tpu.contract_precision<fp32>} : vector<128x128xf32>, vector<8x128xf32>, vector<128x8xf32> -> vector<128x8xf32>
    %c0_5 = arith.constant 0 : index
    %c0_6 = arith.constant 0 : index
    %7 = vector.load %arg7[%c0_5, %c0_6] : memref<128x1xf32, #tpu.memory_space<vmem>>, vector<128x1xf32>
    %cst_7 = arith.constant dense<0xFF800000> : vector<128xf32>
    %8 = vector.multi_reduction <maximumf>, %6, %cst_7 [1] : vector<128x8xf32> to vector<128xf32>
    %9 = vector.shape_cast %8 : vector<128xf32> to vector<128x1xf32>
    %10 = arith.maximumf %7, %9 : vector<128x1xf32>
    %11 = arith.subf %7, %10 : vector<128x1xf32>
    %12 = math.exp %11 : vector<128x1xf32>
    %13 = vector.broadcast %10 : vector<128x1xf32> to vector<128x8xf32>
    %14 = arith.subf %6, %13 : vector<128x8xf32>
    %15 = math.exp %14 : vector<128x8xf32>
    %c0_8 = arith.constant 0 : index
    %c0_9 = arith.constant 0 : index
    %16 = vector.load %arg8[%c0_8, %c0_9] : memref<128x1xf32, #tpu.memory_space<vmem>>, vector<128x1xf32>
    %17 = arith.mulf %12, %16 : vector<128x1xf32>
    %cst_10 = arith.constant dense<0.000000e+00> : vector<128xf32>
    %18 = vector.multi_reduction <add>, %15, %cst_10 [1] : vector<128x8xf32> to vector<128xf32>
    %19 = vector.shape_cast %18 : vector<128xf32> to vector<128x1xf32>
    %20 = arith.addf %17, %19 : vector<128x1xf32>
    %c0_11 = arith.constant 0 : index
    %c0_12 = arith.constant 0 : index
    %21 = vector.load %arg8[%c0_11, %c0_12] : memref<128x1xf32, #tpu.memory_space<vmem>>, vector<128x1xf32>
    tpu.vector_store %arg8[%c0_11, %c0_12], %20 {strides = array<i32>} : memref<128x1xf32, #tpu.memory_space<vmem>>, vector<128x1xf32>,
    %c0_13 = arith.constant 0 : index
    %c0_14 = arith.constant 0 : index
    %22 = vector.load %arg9[%c0_13, %c0_14] : memref<128x128xf32, #tpu.memory_space<vmem>>, vector<128x128xf32>
    %23 = vector.broadcast %12 : vector<128x1xf32> to vector<128x128xf32>
    %24 = arith.mulf %23, %22 : vector<128x128xf32>
    %25 = arith.truncf %15 : vector<128x8xf32> to vector<128x8xbf16>
    %c0_15 = arith.constant 0 : index
    %c0_16 = arith.constant 0 : index
    %c0_17 = arith.constant 0 : index
    %26 = vector.load %arg5[%c0_15, %c0_16, %c0_17] : memref<1x8x128xbf16, #tpu.memory_space<vmem>>, vector<1x8x128xbf16>
    %27 = vector.shape_cast %26 : vector<1x8x128xbf16> to vector<8x128xbf16>
    %cst_18 = arith.constant dense<0.000000e+00> : vector<128x128xf32>
    %28 = tpu.matmul %25, %27, %cst_18 {dimension_numbers = #tpu.dot_dimension_numbers<[1], [0], [0], [1], [0, 0, 1, 1], [], []>} : vector<128x8xbf16>, vector<8x128xbf16>, vector<128x128xf32> -> vector<128x128xf32>
    %29 = arith.addf %24, %28 : vector<128x128xf32>
    %c0_19 = arith.constant 0 : index
    %c0_20 = arith.constant 0 : index
    %30 = vector.load %arg9[%c0_19, %c0_20] : memref<128x128xf32, #tpu.memory_space<vmem>>, vector<128x128xf32>
    tpu.vector_store %arg9[%c0_19, %c0_20], %29 {strides = array<i32>} : memref<128x128xf32, #tpu.memory_space<vmem>>, vector<128x128xf32>,
    %c0_21 = arith.constant 0 : index
    %c0_22 = arith.constant 0 : index
    %31 = vector.load %arg7[%c0_21, %c0_22] : memref<128x1xf32, #tpu.memory_space<vmem>>, vector<128x1xf32>
    tpu.vector_store %arg7[%c0_21, %c0_22], %10 {strides = array<i32>} : memref<128x1xf32, #tpu.memory_space<vmem>>, vector<128x1xf32>,
    %c0_i32_23 = arith.constant 0 : i32
    %32 = arith.cmpi eq, %arg2, %c0_i32_23 : i32
    %33 = arith.extui %32 : i1 to i32
    %c0_i32_24 = arith.constant 0 : i32
    %34 = arith.cmpi ne, %33, %c0_i32_24 : i32
    scf.if %34 {
      %c0_25 = arith.constant 0 : index
      %c0_26 = arith.constant 0 : index
      %35 = vector.load %arg9[%c0_25, %c0_26] : memref<128x128xf32, #tpu.memory_space<vmem>>, vector<128x128xf32>
      %c0_27 = arith.constant 0 : index
      %c0_28 = arith.constant 0 : index
      %36 = vector.load %arg8[%c0_27, %c0_28] : memref<128x1xf32, #tpu.memory_space<vmem>>, vector<128x1xf32>
      %37 = tpu.reciprocal %36 {approx = true} : vector<128x1xf32> -> vector<128x1xf32>
      %38 = vector.broadcast %37 : vector<128x1xf32> to vector<128x128xf32>
      %39 = arith.mulf %35, %38 : vector<128x128xf32>
      %c0_29 = arith.constant 0 : index
      %c0_30 = arith.constant 0 : index
      %c0_31 = arith.constant 0 : index
      %40 = vector.load %arg6[%c0_29, %c0_30, %c0_31] : memref<1x128x128xf32, #tpu.memory_space<vmem>>, vector<1x128x128xf32>
      %41 = vector.shape_cast %40 : vector<1x128x128xf32> to vector<128x128xf32>
      %42 = vector.shape_cast %39 : vector<128x128xf32> to vector<1x128x128xf32>
      tpu.vector_store %arg6[%c0_29, %c0_30, %c0_31], %42 {strides = array<i32>} : memref<1x128x128xf32, #tpu.memory_space<vmem>>, vector<1x128x128xf32>,
    } else {
    }
    return
  }
  func.func @transform_0(%arg0: i32, %arg1: i32, %arg2: i32) -> (i32, i32) {
    %c0_i32 = arith.constant 0 : i32
    %c0_i32_0 = arith.constant 0 : i32
    return %arg1, %c0_i32 : i32, i32
  }
  func.func @transform_1(%arg0: i32, %arg1: i32, %arg2: i32) -> (i32, i32, i32) {
    %c0_i32 = arith.constant 0 : i32
    %c0_i32_0 = arith.constant 0 : i32
    return %arg0, %arg2, %c0_i32 : i32, i32, i32
  }
  func.func @transform_2(%arg0: i32, %arg1: i32, %arg2: i32) -> (i32, i32, i32) {
    %c0_i32 = arith.constant 0 : i32
    %c0_i32_0 = arith.constant 0 : i32
    return %arg0, %arg2, %c0_i32 : i32, i32, i32
  }
  func.func @transform_3(%arg0: i32, %arg1: i32, %arg2: i32) -> (i32, i32, i32) {
    %c0_i32 = arith.constant 0 : i32
    %c0_i32_0 = arith.constant 0 : i32
    return %arg0, %arg1, %c0_i32 : i32, i32, i32
  }
}

</mosaic_0001>

<bundles_post_ra>
// kernel: tpu_custom_call.1
= control target key start
LH: loop header
LB: loop body
LE: loop exit
PB: predicated region body
PF: predicated region fallthrough
CT: control target
= control target key end

     0   :  { %s4133_s0 = inlined_call_operand.hbm [shape: f32[128,128], index: 0, kind: input, shape index: {}]   ;;  %s4134_s1 = inlined_call_operand.hbm [shape: f32[2,8,128], index: 1, kind: input, shape index: {}]   ;;  %s4135_s2 = inlined_call_operand.hbm [shape: bf16[2,8,128], index: 2, kind: input, shape index: {}]   ;;  %s4136_s3 = inlined_call_operand.hbm [shape: f32[2,128,128], index: 3, kind: output, shape index: {}]  }
   0x1   :  { %4145 = sst [smem:[#allocation16_spill]] %s4134_s1 }
   0x2   :  { %8 = vsyncpa [#allocation6], 0 }
   0x3   :  { %9 = vsyncpa [#allocation9], 0 }
   0x4   :  { %11 = vsyncpa [#allocation9 + $0x1], 0 }
   0x5   :  { %12 = vsyncpa [#allocation7], 0 }
   0x6   :  { %14 = vsyncpa [#allocation7 + $0x1], 0  ;;  %s3186_s12 = smov 0   ;;  %s3188_s13 = smov 0  }
   0x7   :  { %s3190_s14 = smov 0   ;;  %s3192_s15 = smov 0  }
   0x8   :  { %s3194_s16 = smov 0   ;;  %s3196_s17 = smov 0  }
   0x9 LB: > { %s39_s18 = sadd.s32 1, %s3149_s16  ;;  %s74_s19 = sadd.s32 1, %s3141_s14  ;;  %s3153_s17 = sphi %s3196_s17, %s20_s17   ;;  %s3149_s16 = sphi %s3194_s16, %s4183_s16   ;;  %s3145_s15 = sphi %s3192_s15, %s4182_s15   ;;  %s3141_s14 = sphi %s3190_s14, %s4181_s14   ;;  %s3137_s13 = sphi %s3188_s13, %s4180_s13   ;;  %s3133_s12 = sphi %s3186_s12, %s4179_s12  }
   0xa   : > { %p41_p0 = scmp.ge.s32.totalorder %s39_s18, 2  ;;  %p81_p1 = scmp.ne.s32.totalorder %s3141_s14, %s3137_s13 }
   0xb   : > { %p82_p2 = scmp.eq.s32.totalorder %s3153_s17, 0  ;;  %p2822_p5 = scmp.lt.s32.totalorder %s3153_s17, 2 }
   0xc   : > { %s4185_s18 = smov (%p41_p0, %s39_s18), 0  ;;  %s183_s21 = sand.u32 1, %s3153_s17  }
   0xd   : > { %4146 = sst [smem:[#allocation15_spill]] %s4185_s18  ;;  %p83_p4 = por %p82_p2, %p81_p1 }
   0xe   : > { %s69_s20 = ssub.s32 %s3149_s16, %s4185_s18  ;;  %s185_s22 = sand.u32 1, %s3141_s14  }
   0xf   : > { %p72_p6 = scmp.eq.s32.totalorder %s69_s20, 0  ;;  %s2406_s23 = sshll.u32 %s3149_s16, 7 }
  0x10   : > { %s2405_s25 = sshll.u32 %s185_s22, 3  ;;  %s4147_s1 = sld [smem:[#allocation16_spill]] }
  0x11   : > { %s3234_s24 = scalar_select %p72_p6, %s3141_s14, %s74_s19  }
  0x12   : > { %p3243_p7 = pnand %p2822_p5, %p83_p4  ;;  %s187_s30 = scalar_lea.vmem [#allocation8], %s2405_s25 }
  0x13   : > { %s195_s4 = sshll.u32 %s187_s30, 4  ;;  %s3249_s5 = scalar_lea.sflag [#allocation9], %s183_s21  ;;  %s3247_s4 = int_to_ptr.vmem [resolvable:$true] %s195_s4 }
  0x14   : > { %s4148_s29 = scalar_select %p3243_p7, 1, 0 }
  0x15   : > { %p4139_p9 = pneg %p3243_p7 }
  0x16   : > { %s3241_s28 = scalar_lea.hbm %s4147_s1, %s2406_s23  ;;  %s2984_s9 = scalar_lea.hbm %s4147_s1, 256 }
  0x17   : > { %s2979_s6 = scalar_lea.hbm %s3241_s28, 128  ;;  %p2985_p12 = scmp.lt.u32.totalorder %s3241_s28, %s4147_s1 }
  0x18   : > { %p2980_p8 = scmp.ne.s32.totalorder %s3241_s28, %s2979_s6  ;;  %p2986_p13 = scmp.lt.u32.totalorder %s2984_s9, %s2979_s6 }
  0x19   : > { %p2988_p2 = scmp.lt.u32.totalorder %s2979_s6, %s3241_s28 }
  0x1a   : > { %p2982_p10 = pnand %p4139_p9, %p2980_p8  ;;  %p2987_p0 = por %p2986_p13, %p2985_p12 }
  0x1c   : > { %p2983_p11 = pneg %p2982_p10  ;;  %p2989_p4 = por %p2988_p2, %p2987_p0 }
  0x1e   : > { %p2990_p5 = pnand %p2989_p4, %p2983_p11 }
  0x20   : > { %2993 = shalt.err (!%p2990_p5)
}
  0x21   : > { %s2994_s19 = scalar_lea.vmem %s3247_s4, 128  ;;  %s3155_s20 = smov [#allocation8]  }
  0x22   : > { %p2995_p6 = scmp.ne.s32.totalorder %s3247_s4, %s2994_s19  ;;  %s2999_s21 = sshll.u32 %s3155_s20, 4  ;;  %s3000_s21 = int_to_ptr.vmem [resolvable:$false] %s2999_s21 }
  0x23   : > { %s3001_s23 = scalar_lea.vmem %s3000_s21, 256  ;;  %p3002_p3 = scmp.lt.s32.totalorder %s3247_s4, %s3000_s21 }
  0x24   : > { %p2997_p8 = pnand %p2995_p6, %p4139_p9  ;;  %p3003_p12 = scmp.lt.s32.totalorder %s3001_s23, %s2994_s19 }
  0x26   : > { %p2998_p10 = pneg %p2997_p8  ;;  %p3004_p13 = por %p3003_p12, %p3002_p3 }
  0x28   : > { %p3005_p0 = pnand %p3004_p13, %p2998_p10 }
  0x2a   : > { %3008 = shalt.err (!%p3005_p0)
}
  0x2b   : > { %2813 = dma.hbm_to_vmem [thread:$0]  (!%p3243_p7), %s3241_s28, 128, %s3247_s4, %s3249_s5  }
  0x2c   : > { %s3278_s25 = sadd.s32 4294967295, %s3153_s17   ;;  %s2401_s26 = sadd.s32 4294967294, %s3153_s17  }
  0x2d   : > { %p87_p3 = scmp.ne.s32.totalorder %s3137_s13, %s3133_s12  ;;  %p4138_p11 = scmp.eq.s32.totalorder %s3278_s25, 0 }
  0x2e   : > { %p141_p2 = scmp.eq.s32.totalorder %s3278_s25, 1  ;;  %p147_p4 = scmp.eq.s32.totalorder %s2401_s26, 1 }
  0x2f   : > { %p3287_p5 = por %p4138_p11, %p87_p3  ;;  %p2402_p6 = scmp.ge.s32.totalorder %s3153_s17, 1 }
  0x30   : > { %p3295_p8 = por %p141_p2, %p81_p1  ;;  %p3299_p10 = por %p147_p4, %p87_p3 }
  0x31   : > { %s4149_s27 = scalar_select %p3287_p5, 1, 0 }
  0x32   : > { %s4150_s28 = scalar_select %p3295_p8, 1, 0 }
  0x33   : > { %s4151_s30 = scalar_select %p3299_p10, 1, 0 }
  0x34   : > { %p154_p12 = scmp.lt.s32.totalorder %s3153_s17, 3  ;;  %s2407_s4 = sshll.u32 %s185_s22, 2 }
  0x35   : > { %s3156_s7 = smov [#allocation5]   ;;  %s2408_s9 = sshll.u32 %s3149_s16, 6 }
  0x36   : > { %p3306_p13 = pnand %p2402_p6, %p154_p12  ;;  %s169_s8 = sshll.u32 %s3156_s7, 4  ;;  %s3310_s8 = int_to_ptr.vmem [resolvable:$true] %s169_s8 }
  0x37   : > { %s206_s10 = scalar_lea.vmem [#allocation10], %s2407_s4  ;;  %s3324_s21 = scalar_lea.hbm %s4135_s2, %s2408_s9 }
  0x38   : > { %s4152_s6 = scalar_select %p3306_p13, 1, 0 }
  0x39   : > { %p2806_p1 = pneg %p3306_p13  ;;  %s214_s11 = sshll.u32 %s206_s10, 4  ;;  %s3326_s11 = int_to_ptr.vmem [resolvable:$true] %s214_s11 }
  0x3a   : > { %s3009_s7 = scalar_lea.hbm %s4133_s0, 2048 }
  0x3b   : > { %p3317_p0 = pnand %p2806_p1, %p4138_p11  ;;  %p3010_p3 = scmp.ne.s32.totalorder %s4133_s0, %s3009_s7 }
  0x3c   : > { %p3016_p12 = scmp.lt.u32.totalorder %s3009_s7, %s4133_s0 }
  0x3d   : > { %p3011_p2 = pneg %p3317_p0 }
  0x3f   : > { %p3012_p4 = pnand %p3011_p2, %p3010_p3 }
  0x41   : > { %p3013_p6 = pneg %p3012_p4 }
  0x43   : > { %p3018_p1 = pnand %p3016_p12, %p3013_p6 }
  0x45   : > { %3021 = shalt.err (!%p3018_p1)
}
  0x46   : > { %s3022_s9 = scalar_lea.vmem %s3310_s8, 2048  ;;  %p3030_p8 = scmp.lt.s32.totalorder %s3310_s8, %s3310_s8 }
  0x47   : > { %p3023_p11 = scmp.ne.s32.totalorder %s3310_s8, %s3022_s9  ;;  %p3031_p5 = scmp.lt.s32.totalorder %s3022_s9, %s3022_s9 }
  0x49   : > { %p3025_p9 = pnand %p3023_p11, %p3011_p2  ;;  %p3032_p13 = por %p3031_p5, %p3030_p8 }
  0x4b   : > { %p3026_p10 = pneg %p3025_p9 }
  0x4d   : > { %p3033_p7 = pnand %p3032_p13, %p3026_p10 }
  0x4f   : > { %3036 = shalt.err (!%p3033_p7)
}
  0x50   : > { %s3157_s1 = smov 128   ;;  %s3158_s18 = smov 8  }
  0x51   : > { %2809 = dma.hbm_to_vmem [thread:$0]  (!%p3317_p0), %s4133_s0, 2048, %s3310_s8, [#allocation6], %s3157_s1, %s3157_s1, %s3158_s18  }
  0x52   : > { %s3037_s23 = scalar_lea.hbm %s3324_s21, 64  ;;  %p4154_p11 = scmp.ne.s32.totalorder %s4148_s29, 0 }
  0x53   : > { %p3038_p9 = scmp.ne.s32.totalorder %s3324_s21, %s3037_s23  ;;  %s3042_s4 = scalar_lea.hbm %s4135_s2, 128 }
  0x54   : > { %p4155_p5 = pneg %p4154_p11  ;;  %p3043_p10 = scmp.lt.u32.totalorder %s3324_s21, %s4135_s2 }
  0x55   : > { %p3044_p13 = scmp.lt.u32.totalorder %s3042_s4, %s3037_s23  ;;  %p3046_p2 = scmp.lt.u32.totalorder %s3037_s23, %s3324_s21 }
  0x56   : > { %p3040_p8 = pnand %p3038_p9, %p4155_p5 }
  0x57   : > { %p3045_p3 = por %p3044_p13, %p3043_p10 }
  0x58   : > { %p3041_p7 = pneg %p3040_p8 }
  0x59   : > { %p3047_p4 = por %p3046_p2, %p3045_p3 }
  0x5b   : > { %p3048_p6 = pnand %p3047_p4, %p3041_p7 }
  0x5d   : > { %3051 = shalt.err (!%p3048_p6)
}
  0x5e   : > { %s3052_s8 = scalar_lea.vmem %s3326_s11, 64  ;;  %p4156_p12 = pmov %p4155_p5 }
  0x5f   : > { %p3053_p0 = scmp.ne.s32.totalorder %s3326_s11, %s3052_s8  ;;  %s3159_s19 = smov [#allocation10]  }
  0x60   : > { %s3057_s1 = sshll.u32 %s3159_s19, 4  ;;  %s3058_s1 = int_to_ptr.vmem [resolvable:$false] %s3057_s1 }
  0x61   : > { %p3055_p1 = pnand %p3053_p0, %p4156_p12  ;;  %s3059_s18 = scalar_lea.vmem %s3058_s1, 128 }
  0x62   : > { %p3060_p5 = scmp.lt.s32.totalorder %s3326_s11, %s3058_s1  ;;  %p3061_p8 = scmp.lt.s32.totalorder %s3059_s18, %s3052_s8 }
  0x63   : > { %p3056_p9 = pneg %p3055_p1 }
  0x64   : > { %p3062_p10 = por %p3061_p8, %p3060_p5 }
  0x66   : > { %p3063_p13 = pnand %p3062_p10, %p3056_p9 }
  0x68   : > { %3066 = shalt.err (!%p3063_p13)
}
  0x69   : > { %2816 = dma.hbm_to_vmem [thread:$0]  (!%p4154_p11), %s3324_s21, 64, %s3326_s11, %s3249_s5  }
  0x6a   : > { %p4157_p7 = scmp.ne.s32.totalorder %s4152_s6, 0 }
  0x6b   : > { %p4158_p3 = scmp.eq.s32.totalorder (!%p4157_p7), %s3278_s25, 0 }
  0x6c   : > { %223 = sbr.rel (%p4157_p7) target bundleno = 1067 (0x42b), region = 32 }
  0x73   : > { %3120 = dma.done.wait (%p4158_p3), [#allocation6], 2048   ;;  %p4159_p2 = pmov %p4158_p3 }
  0x74   : > { %s229_s22 = sand.u32 1, %s3278_s25   ;;  %s3381_s20 = sand.u32 1, %s3137_s13  }
  0x75   : > { %3122 = vsyncadd (%p4159_p2), [#allocation6], 4294965248  ;;  %s2411_s29 = sshll.u32 %s3381_s20, 3  ;;  %s230_s23 = scalar_lea.sflag [#allocation9], %s229_s22 }
  0x76   : > { %s233_s26 = scalar_lea.vmem [#allocation8], %s2411_s29  ;;  %p4160_p11 = scmp.ne.s32.totalorder %s4149_s27, 0 }
  0x78   : > { %3124 = dma.done.wait (%p4160_p11), %s230_s23, 192  }
  0x79   : > { %3126 = vsyncadd (%p4160_p11), %s230_s23, 4294967104  ;;  %v342_v0 = vld [vmem:[%s233_s26] sm:$0xff]  ;;  %v328_v6 = vld [vmem:[#allocation5 + $0x10] sm:$0xff]  ;;  %vm277_vm0 = vcmask 7168   ;;  %vm1450_vm1 = vcmask 64512   ;;  %s2412_s5 = sshll.u32 %s3381_s20, 2 }
  0x7a   : > { %v326_v1 = vld [vmem:[#allocation5] sm:$0xff]  ;;  %v327_v2 = vld [vmem:[#allocation5 + $0x8] sm:$0xff]  ;;  %v3388_v3 = vand.u32 4294901760, %v342_v0  ;;  %v329_v7 = vld [vmem:[#allocation5 + $0x18] sm:$0xff]  ;;  %v3394_v9 = vand.u32 4294901760, %v328_v6  ;;  %s242_s25 = scalar_lea.vmem [#allocation10], %s2412_s5 }
  0x7b   : > { %v3390_v4 = vand.u32 4294901760, %v326_v1  ;;  %v3392_v5 = vand.u32 4294901760, %v327_v2  ;;  %v330_v8 = vld [vmem:[#allocation5 + $0x20] sm:$0xff]  ;;  %v3396_v10 = vand.u32 4294901760, %v329_v7  ;;  %v331_v12 = vld [vmem:[#allocation5 + $0x28] sm:$0xff]  ;;  %v332_v13 = vld [vmem:[#allocation5 + $0x30] sm:$0xff] }
  0x7c   : > { %v3398_v11 = vand.u32 4294901760, %v330_v8  ;;  %v333_v14 = vld [vmem:[#allocation5 + $0x38] sm:$0xff]  ;;  %v3401_v15 = vsub.f32 %v342_v0, %v3388_v3  ;;  %2539 = vmatprep.subr.mxu1 %v3388_v3  ;;  %v3410_v18 = vand.u32 4294901760, %v331_v12  ;;  %v3414_v19 = vsub.f32 %v328_v6, %v3394_v9  ;;  %v334_v37 = vld [vmem:[#allocation5 + $0x40] sm:$0xff]  ;;  %v335_v42 = vld [vmem:[#allocation5 + $0x48] sm:$0xff]  ;;  %s2413_s27 = sshll.u32 %s3381_s20, 7 }
  0x7d   : > { %v3405_v16 = vsub.f32 %v326_v1, %v3390_v4  ;;  %v3408_v17 = vsub.f32 %v327_v2, %v3392_v5  ;;  %2540 = vmatpush3.xpose.msra.mxu1 %v3388_v3  ;;  %v3417_v20 = vsub.f32 %v329_v7, %v3396_v10  ;;  %v3422_v22 = vand.u32 4294901760, %v332_v13  ;;  %v336_v43 = vld [vmem:[#allocation5 + $0x50] sm:$0xff]  ;;  %v337_v44 = vld [vmem:[#allocation5 + $0x58] sm:$0xff]  ;;  %v338_v46 = vld [vmem:[#allocation5 + $0x60] sm:$0xff]  ;;  %s4049_s6 = scalar_lea.vmem [#allocation11], %s2413_s27  ;;  %s2427_s11 = sshll.u32 %s3145_s15, 11 }
  0x7e   : > { %v3420_v21 = vsub.f32 %v330_v8, %v3398_v11  ;;  %2591 = vmatprep.subr.mxu0 %v3401_v15  ;;  %v3429_v25 = vsub.f32 %v331_v12, %v3410_v18  ;;  %v3431_v26 = vand.u32 4294901760, %v333_v14  ;;  %v431_v27 = vand.u32 4294901760, %v3414_v19  ;;  %v339_v55 = vld [vmem:[#allocation5 + $0x68] sm:$0xff]  ;;  %v340_v60 = vld [vmem:[#allocation5 + $0x70] sm:$0xff]  ;;  %s2277_s21 = sshll.u32 %s4049_s6, 4  ;;  %s4081_s10 = scalar_lea.hbm %s4136_s3, %s2427_s11  ;;  %s4083_s21 = int_to_ptr.vmem [resolvable:$true] %s2277_s21 }
  0x7f   : > { %2593 = vmatprep.mubr.f32.mxu0 %v3405_v16  ;;  %v411_v23 = vand.u32 4294901760, %v3405_v16  ;;  %v421_v24 = vand.u32 4294901760, %v3408_v17  ;;  %2592 = vmatpush3.xpose.msra.mxu0 %v3401_v15  ;;  %v441_v28 = vand.u32 4294901760, %v3417_v20  ;;  %v3438_v30 = vsub.f32 %v332_v13, %v3422_v22  ;;  %s2262_s9 = scalar_lea.sflag [#allocation7], %s3381_s20  ;;  %s3067_s15 = scalar_lea.vmem %s4083_s21, 2048 }
  0x80   : > { %v451_v29 = vand.u32 4294901760, %v3420_v21  ;;  %2617 = vmatprep.subr.mxu0 %v3388_v3  ;;  %v461_v33 = vand.u32 4294901760, %v3429_v25  ;;  %v3449_v34 = vsub.f32 %v333_v14, %v3431_v26  ;;  %v432_v35 = vsub.f32 %v3414_v19, %v431_v27  ;;  %p3068_p4 = scmp.ne.s32.totalorder %s4083_s21, %s3067_s15  ;;  %p4175_p6 = scmp.ne.s32.totalorder %s4150_s28, 0 }
  0x81   : > { %v412_v31 = vsub.f32 %v3405_v16, %v411_v23  ;;  %v422_v32 = vsub.f32 %v3408_v17, %v421_v24  ;;  %v442_v36 = vsub.f32 %v3417_v20, %v441_v28  ;;  %v471_v41 = vand.u32 4294901760, %v3438_v30  ;;  %s3163_s8 = smov [#allocation11]  }
  0x82   : > { %2594 = vmatmul.mubr.f32.vlgmr.msra.gmra.mrb[0].mxu0 %v3408_v17  ;;  %v452_v40 = vsub.f32 %v3420_v21, %v451_v29  ;;  %v433_v45 = vand.u32 4294901760, %v432_v35  ;;  %v462_v48 = vsub.f32 %v3429_v25, %v461_v33  ;;  %v481_v49 = vand.u32 4294901760, %v3449_v34  ;;  %p3069_p0 = pnand %p3068_p4, %p4175_p6  ;;  %s3071_s19 = sshll.u32 %s3163_s8, 4  ;;  %s3072_s19 = int_to_ptr.vmem [resolvable:$false] %s3071_s19 }
  0x83   : > { %v413_v38 = vand.u32 4294901760, %v412_v31  ;;  %v423_v39 = vand.u32 4294901760, %v422_v32  ;;  %2618 = vmatpush3.xpose.msra.mxu0 %v3388_v3  ;;  %2596 = vmatprep.mubr.f32.mxu0 %v3414_v19  ;;  %v443_v47 = vand.u32 4294901760, %v442_v36  ;;  %v3468_v50 = vand.u32 4294901760, %v334_v37  ;;  %v341_v32 = vld [vmem:[#allocation5 + $0x78] sm:$0xff]  ;;  %s3073_s1 = scalar_lea.vmem %s3072_s19, 4096  ;;  %p3074_p1 = scmp.lt.s32.totalorder %s4083_s21, %s3072_s19 }
  0x84   : > { %v572_v51 = vand.u32 4294901760, %v3401_v15  ;;  %v3471_v52 = vand.u32 4294901760, %v335_v42  ;;  %v3473_v53 = vand.u32 4294901760, %v336_v43  ;;  %v3475_v54 = vand.u32 4294901760, %v337_v44  ;;  %p3070_p12 = pneg %p3069_p0  ;;  %p3075_p9 = scmp.lt.s32.totalorder %s3073_s1, %s3067_s15 }
  0x85   : > { %2541 = vmatprep.mubr.f32.mxu1 %v413_v38  ;;  %v453_v56 = vand.u32 4294901760, %v452_v40  ;;  %v472_v57 = vsub.f32 %v3438_v30, %v471_v41  ;;  %v3482_v58 = vsub.f32 %v334_v37, %v3468_v50  ;;  %v3484_v59 = vand.u32 4294901760, %v338_v46 }
  0x86   : > { %2542 = vmatmul.mubr.f32.vlgmr.msra.gmra.mrb[0].mxu1 %v423_v39  ;;  %2597 = vmatmul.mubr.f32.gmra.mrb[2].mxu0 %v3417_v20  ;;  %v3488_v61 = vsub.f32 %v335_v42, %v3471_v52  ;;  %v3491_v62 = vsub.f32 %v336_v43, %v3473_v53  ;;  %v482_v63 = vsub.f32 %v3449_v34, %v481_v49  ;;  %v3497_v1 = vand.u32 4294901760, %v339_v55  ;;  %p3076_p5 = por %p3075_p9, %p3074_p1 }
  0x87   : > { %2544 = vmatprep.mubr.f32.mxu1 %v433_v45  ;;  %2599 = vmatprep.mubr.f32.mxu0 %v3420_v21  ;;  %v491_v0 = vand.u32 4294901760, %v3482_v58  ;;  %v463_v2 = vand.u32 4294901760, %v462_v48  ;;  %v3501_v7 = vsub.f32 %v337_v44, %v3475_v54  ;;  %v3503_v8 = vand.u32 4294901760, %v340_v60 }
  0x88   : > { %2643 = vmatprep.subr.mxu0 %v572_v51  ;;  %v501_v6 = vand.u32 4294901760, %v3488_v61  ;;  %v473_v12 = vand.u32 4294901760, %v472_v57  ;;  %v511_v14 = vand.u32 4294901760, %v3491_v62  ;;  %v3511_v31 = vsub.f32 %v338_v46, %v3484_v59  ;;  %p3077_p8 = pnand %p3076_p5, %p3070_p12 }
  0x89   : > { %v492_v13 = vsub.f32 %v3482_v58, %v491_v0  ;;  %v483_v35 = vand.u32 4294901760, %v482_v63  ;;  %v3515_v36 = vsub.f32 %v339_v55, %v3497_v1  ;;  %v521_v38 = vand.u32 4294901760, %v3501_v7 }
  0x8a   : > { %2545 = vmatmul.mubr.f32.gmra.mrb[2].mxu1 %v443_v47  ;;  %2600 = vmatmul.mubr.f32.gmra.mrb[4].mxu0 %v3429_v25  ;;  %v502_v37 = vsub.f32 %v3488_v61, %v501_v6  ;;  %v3522_v39 = vsub.f32 %v340_v60, %v3503_v8  ;;  %v3524_v40 = vand.u32 4294901760, %v341_v32  ;;  %v512_v43 = vsub.f32 %v3491_v62, %v511_v14 }
  0x8b   : > { %2547 = vmatprep.mubr.f32.mxu1 %v453_v56  ;;  %2602 = vmatprep.mubr.f32.mxu0 %v3438_v30  ;;  %v493_v42 = vand.u32 4294901760, %v492_v13  ;;  %v531_v44 = vand.u32 4294901760, %v3511_v31  ;;  %v573_v45 = vsub.f32 %v3401_v15, %v572_v51  ;;  %v522_v48 = vsub.f32 %v3501_v7, %v521_v38 }
  0x8c   : > { %v503_v47 = vand.u32 4294901760, %v502_v37  ;;  %v541_v55 = vand.u32 4294901760, %v3515_v36  ;;  %v3535_v56 = vsub.f32 %v341_v32, %v3524_v40  ;;  %v513_v57 = vand.u32 4294901760, %v512_v43 }
  0x8d   : > { %v574_v46 = vand.u32 4294901760, %v573_v45  ;;  %v532_v60 = vsub.f32 %v3511_v31, %v531_v44  ;;  %v551_v16 = vand.u32 4294901760, %v3522_v39  ;;  %vm1949_vm2 = vcmask 1043456  }
  0x8e   : > { %2548 = vmatmul.mubr.f32.gmra.mrb[4].mxu1 %v463_v2  ;;  %2603 = vmatmul.mubr.f32.gmra.mrb[6].mxu0 %v3449_v34  ;;  %v542_v63 = vsub.f32 %v3515_v36, %v541_v55  ;;  %v561_v17 = vand.u32 4294901760, %v3535_v56 }
  0x8f   : > { %2550 = vmatprep.mubr.f32.mxu1 %v473_v12  ;;  %2619 = vmatprep.mubr.f32.mxu0 %v411_v23  ;;  %v523_v23 = vand.u32 4294901760, %v522_v48  ;;  %v552_v2 = vsub.f32 %v3522_v39, %v551_v16 }
  0x90   : > { %2565 = vmatprep.subr.mxu1 %v574_v46  ;;  %v543_v19 = vand.u32 4294901760, %v542_v63 }
  0x91   : > { %2566 = vmatpush3.xpose.msra.mxu1 %v574_v46  ;;  %v553_v20 = vand.u32 4294901760, %v552_v2  ;;  %v3161_v46 = vmov 0  }
  0x92   : > { %2551 = vmatmul.mubr.f32.gmra.mrb[6].mxu1 %v483_v35  ;;  %2620 = vmatmul.mubr.f32.vlgmr.msra.gmra.mrb[0].mxu0 %v421_v24  ;;  %v533_v24 = vand.u32 4294901760, %v532_v60 }
  0x93   : > { %2553 = vmatprep.mubr.f32.mxu1 %v493_v42  ;;  %2644 = vmatpush3.xpose.msra.mxu0 %v572_v51 }
  0x94   : > { %2622 = vmatprep.mubr.f32.mxu0 %v431_v27  ;;  %2669 = vmatprep.subr.mxu0 %v3388_v3  ;;  %v562_v27 = vsub.f32 %v3535_v56, %v561_v17 }
  0x95   : > { %2713 = vmatprep.subr.mxu1 %v3401_v15  ;;  %2881 = vset.pattern.permute.xlu0 %v3161_v46 }
  0x96   : > { %2554 = vmatmul.mubr.f32.gmra.mrb[8].mxu1 %v503_v47  ;;  %2623 = vmatmul.mubr.f32.gmra.mrb[2].mxu0 %v441_v28  ;;  %v563_v28 = vand.u32 4294901760, %v562_v27 }
  0x97   : > { %2556 = vmatprep.mubr.f32.mxu1 %v513_v57  ;;  %2625 = vmatprep.mubr.f32.mxu0 %v451_v29 }
  0x98   : > { %2882 = vset.pattern.permute.xlu1 %v3161_v46 }
  0x9a   : > { %2557 = vmatmul.mubr.f32.gmra.mrb[10].mxu1 %v523_v23  ;;  %2626 = vmatmul.mubr.f32.gmra.mrb[4].mxu0 %v461_v33 }
  0x9b   : > { %2559 = vmatprep.mubr.f32.mxu1 %v533_v24  ;;  %2628 = vmatprep.mubr.f32.mxu0 %v471_v41 }
  0x9e   : > { %2560 = vmatmul.mubr.f32.gmra.mrb[12].mxu1 %v543_v19  ;;  %2629 = vmatmul.mubr.f32.gmra.mrb[6].mxu0 %v481_v49  ;;  %v3162_v19 = vmov 0.0  }
  0x9f   : > { %2562 = vmatprep.mubr.f32.mxu1 %v553_v20  ;;  %2631 = vmatprep.mubr.f32.mxu0 %v491_v0  ;;  %294 = vst.msk [vmem:[#allocation3] sm:$0xff] %vm277_vm0, %v3162_v19  ;;  %295 = vst.msk [vmem:[#allocation3 + $0x8] sm:$0xff] %vm277_vm0, %v3162_v19 }
  0xa0   : > { %296 = vst.msk [vmem:[#allocation3 + $0x10] sm:$0xff] %vm277_vm0, %v3162_v19  ;;  %297 = vst.msk [vmem:[#allocation3 + $0x18] sm:$0xff] %vm277_vm0, %v3162_v19 }
  0xa1   : > { %298 = vst.msk [vmem:[#allocation3 + $0x20] sm:$0xff] %vm277_vm0, %v3162_v19  ;;  %299 = vst.msk [vmem:[#allocation3 + $0x28] sm:$0xff] %vm277_vm0, %v3162_v19 }
  0xa2   : > { %2563 = vmatmul.mubr.f32.gmra.mrb[14].mxu1 %v563_v28  ;;  %2632 = vmatmul.mubr.f32.gmra.mrb[8].mxu0 %v501_v6  ;;  %300 = vst.msk [vmem:[#allocation3 + $0x30] sm:$0xff] %vm277_vm0, %v3162_v19  ;;  %301 = vst.msk [vmem:[#allocation3 + $0x38] sm:$0xff] %vm277_vm0, %v3162_v19 }
  0xa3   : > { %2567 = vmatprep.mubr.f32.mxu1 %v3390_v4  ;;  %2634 = vmatprep.mubr.f32.mxu0 %v511_v14  ;;  %302 = vst.msk [vmem:[#allocation3 + $0x40] sm:$0xff] %vm277_vm0, %v3162_v19  ;;  %303 = vst.msk [vmem:[#allocation3 + $0x48] sm:$0xff] %vm277_vm0, %v3162_v19 }
  0xa4   : > { %304 = vst.msk [vmem:[#allocation3 + $0x50] sm:$0xff] %vm277_vm0, %v3162_v19  ;;  %305 = vst.msk [vmem:[#allocation3 + $0x58] sm:$0xff] %vm277_vm0, %v3162_v19 }
  0xa5   : > { %306 = vst.msk [vmem:[#allocation3 + $0x60] sm:$0xff] %vm277_vm0, %v3162_v19  ;;  %307 = vst.msk [vmem:[#allocation3 + $0x68] sm:$0xff] %vm277_vm0, %v3162_v19 }
  0xa6   : > { %2568 = vmatmul.mubr.f32.vlgmr.msra.gmra.mrb[0].mxu1 %v3392_v5  ;;  %2635 = vmatmul.mubr.f32.gmra.mrb[10].mxu0 %v521_v38  ;;  %308 = vst.msk [vmem:[#allocation3 + $0x70] sm:$0xff] %vm277_vm0, %v3162_v19  ;;  %309 = vst.msk [vmem:[#allocation3 + $0x78] sm:$0xff] %vm277_vm0, %v3162_v19 }
  0xa7   : > { %2570 = vmatprep.mubr.f32.mxu1 %v3394_v9  ;;  %2637 = vmatprep.mubr.f32.mxu0 %v531_v44 }
  0xa8   : > { %2714 = vmatpush3.xpose.msra.mxu1 %v3401_v15 }
  0xaa   : > { %2571 = vmatmul.mubr.f32.gmra.mrb[2].mxu1 %v3396_v10  ;;  %2638 = vmatmul.mubr.f32.gmra.mrb[12].mxu0 %v541_v55 }
  0xab   : > { %2573 = vmatprep.mubr.f32.mxu1 %v3398_v11  ;;  %2640 = vmatprep.mubr.f32.mxu0 %v551_v16 }
  0xae   : > { %2574 = vmatmul.mubr.f32.gmra.mrb[4].mxu1 %v3410_v18  ;;  %2641 = vmatmul.mubr.f32.gmra.mrb[14].mxu0 %v561_v17 }
  0xaf   : > { %2576 = vmatprep.mubr.f32.mxu1 %v3422_v22  ;;  %2645 = vmatprep.mubr.f32.mxu0 %v3390_v4 }
  0xb2   : > { %2577 = vmatmul.mubr.f32.gmra.mrb[6].mxu1 %v3431_v26  ;;  %2646 = vmatmul.mubr.f32.vlgmr.msra.gmra.mrb[0].mxu0 %v3392_v5 }
  0xb3   : > { %2579 = vmatprep.mubr.f32.mxu1 %v3468_v50  ;;  %2670 = vmatpush3.xpose.msra.mxu0 %v3388_v3  ;;  %v3160_v3 = vmov -inf  }
  0xb4   : > { %2648 = vmatprep.mubr.f32.mxu0 %v3394_v9  ;;  %278 = vst.msk [vmem:[#allocation2] sm:$0xff] %vm277_vm0, %v3160_v3  ;;  %279 = vst.msk [vmem:[#allocation2 + $0x8] sm:$0xff] %vm277_vm0, %v3160_v3 }
  0xb5   : > { %280 = vst.msk [vmem:[#allocation2 + $0x10] sm:$0xff] %vm277_vm0, %v3160_v3  ;;  %281 = vst.msk [vmem:[#allocation2 + $0x18] sm:$0xff] %vm277_vm0, %v3160_v3 }
  0xb6   : > { %2580 = vmatmul.mubr.f32.gmra.mrb[8].mxu1 %v3471_v52  ;;  %2649 = vmatmul.mubr.f32.gmra.mrb[2].mxu0 %v3396_v10  ;;  %282 = vst.msk [vmem:[#allocation2 + $0x20] sm:$0xff] %vm277_vm0, %v3160_v3  ;;  %283 = vst.msk [vmem:[#allocation2 + $0x28] sm:$0xff] %vm277_vm0, %v3160_v3 }
  0xb7   : > { %2582 = vmatprep.mubr.f32.mxu1 %v3473_v53  ;;  %2651 = vmatprep.mubr.f32.mxu0 %v3398_v11  ;;  %284 = vst.msk [vmem:[#allocation2 + $0x30] sm:$0xff] %vm277_vm0, %v3160_v3  ;;  %285 = vst.msk [vmem:[#allocation2 + $0x38] sm:$0xff] %vm277_vm0, %v3160_v3 }
  0xb8   : > { %286 = vst.msk [vmem:[#allocation2 + $0x40] sm:$0xff] %vm277_vm0, %v3160_v3  ;;  %287 = vst.msk [vmem:[#allocation2 + $0x48] sm:$0xff] %vm277_vm0, %v3160_v3 }
  0xb9   : > { %288 = vst.msk [vmem:[#allocation2 + $0x50] sm:$0xff] %vm277_vm0, %v3160_v3  ;;  %289 = vst.msk [vmem:[#allocation2 + $0x58] sm:$0xff] %vm277_vm0, %v3160_v3 }
  0xba   : > { %2583 = vmatmul.mubr.f32.gmra.mrb[10].mxu1 %v3475_v54  ;;  %2652 = vmatmul.mubr.f32.gmra.mrb[4].mxu0 %v3410_v18  ;;  %290 = vst.msk [vmem:[#allocation2 + $0x60] sm:$0xff] %vm277_vm0, %v3160_v3  ;;  %291 = vst.msk [vmem:[#allocation2 + $0x68] sm:$0xff] %vm277_vm0, %v3160_v3 }
  0xbb   : > { %2585 = vmatprep.mubr.f32.mxu1 %v3484_v59  ;;  %2654 = vmatprep.mubr.f32.mxu0 %v3422_v22  ;;  %292 = vst.msk [vmem:[#allocation2 + $0x70] sm:$0xff] %vm277_vm0, %v3160_v3  ;;  %293 = vst.msk [vmem:[#allocation2 + $0x78] sm:$0xff] %vm277_vm0, %v3160_v3 }
  0xbe   : > { %2586 = vmatmul.mubr.f32.gmra.mrb[12].mxu1 %v3497_v1  ;;  %2655 = vmatmul.mubr.f32.gmra.mrb[6].mxu0 %v3431_v26 }
  0xbf   : > { %2588 = vmatprep.mubr.f32.mxu1 %v3503_v8  ;;  %2657 = vmatprep.mubr.f32.mxu0 %v3468_v50  ;;  %v3800_v46 = vld [vmem:[#allocation2 + $0x48] sm:$0xff] }
  0xc2   : > { %2589 = vmatmul.mubr.f32.gmra.mrb[14].mxu1 %v3524_v40  ;;  %2658 = vmatmul.mubr.f32.gmra.mrb[8].mxu0 %v3471_v52 }
  0xc3   : > { %2605 = vmatprep.mubr.f32.mxu1 %v3482_v58  ;;  %2660 = vmatprep.mubr.f32.mxu0 %v3473_v53 }
  0xc6   : > { %2606 = vmatmul.mubr.f32.vlgmr.msra.gmra.mrb[8].mxu1 %v3488_v61  ;;  %2661 = vmatmul.mubr.f32.gmra.mrb[10].mxu0 %v3475_v54 }
  0xc7   : > { %2608 = vmatprep.mubr.f32.mxu1 %v3491_v62  ;;  %2663 = vmatprep.mubr.f32.mxu0 %v3484_v59 }
  0xca   : > { %2609 = vmatmul.mubr.f32.gmra.mrb[10].mxu1 %v3501_v7  ;;  %2664 = vmatmul.mubr.f32.gmra.mrb[12].mxu0 %v3497_v1 }
  0xcb   : > { %2611 = vmatprep.mubr.f32.mxu1 %v3511_v31  ;;  %2666 = vmatprep.mubr.f32.mxu0 %v3503_v8 }
  0xce   : > { %2612 = vmatmul.mubr.f32.gmra.mrb[12].mxu1 %v3515_v36  ;;  %2667 = vmatmul.mubr.f32.gmra.mrb[14].mxu0 %v3524_v40 }
  0xcf   : > { %2614 = vmatprep.mubr.f32.mxu1 %v3522_v39  ;;  %2671 = vmatprep.mubr.f32.mxu0 %v3390_v4 }
  0xd2   : > { %2615 = vmatmul.mubr.f32.gmra.mrb[14].mxu1 %v3535_v56  ;;  %2672 = vmatmul.mubr.f32.vlgmr.msra.gmra.mrb[0].mxu0 %v3392_v5 }
  0xd3   : > { %2674 = vmatprep.mubr.f32.mxu0 %v3394_v9 }
  0xd6   : > { %2675 = vmatmul.mubr.f32.gmra.mrb[2].mxu0 %v3396_v10 }
  0xd7   : > { %2677 = vmatprep.mubr.f32.mxu0 %v3398_v11 }
  0xda   : > { %2678 = vmatmul.mubr.f32.gmra.mrb[4].mxu0 %v3410_v18 }
  0xdb   : > { %2680 = vmatprep.mubr.f32.mxu0 %v3422_v22 }
  0xde   : > { %2681 = vmatmul.mubr.f32.gmra.mrb[6].mxu0 %v3431_v26 }
  0xdf   : > { %2683 = vmatprep.mubr.f32.mxu0 %v3468_v50 }
  0xe2   : > { %2684 = vmatmul.mubr.f32.gmra.mrb[8].mxu0 %v3471_v52 }
  0xe3   : > { %2686 = vmatprep.mubr.f32.mxu0 %v3473_v53 }
  0xe6   : > { %2687 = vmatmul.mubr.f32.gmra.mrb[10].mxu0 %v3475_v54 }
  0xe7   : > { %2689 = vmatprep.mubr.f32.mxu0 %v3484_v59 }
  0xea   : > { %2690 = vmatmul.mubr.f32.gmra.mrb[12].mxu0 %v3497_v1 }
  0xeb   : > { %2692 = vmatprep.mubr.f32.mxu0 %v3503_v8 }
  0xee   : > { %2693 = vmatmul.mubr.f32.gmra.mrb[14].mxu0 %v3524_v40 }
 0x179   : > { %v2569_v4 = vpop.f32.mrb[0].mxu1 }
 0x17a   : > { %v641_v5 = vpop.f32.mrb[1].mxu1 }
 0x17d   : > { %v2572_v9 = vpop.f32.mrb[2].mxu1 }
 0x17e   : > { %v653_v10 = vpop.f32.mrb[3].mxu1 }
 0x181   : > { %v2575_v11 = vpop.f32.mrb[4].mxu1 }
 0x182   : > { %v665_v15 = vpop.f32.mrb[5].mxu1 }
 0x185   : > { %v2578_v18 = vpop.f32.mrb[6].mxu1 }
 0x186   : > { %v677_v21 = vpop.f32.mrb[7].mxu1 }
 0x199   : > { %v2607_v22 = vpop.f32.mrb[8].mxu1 }
 0x19a   : > { %v861_v25 = vpop.f32.mrb[9].mxu1 }
 0x19d   : > { %v2610_v26 = vpop.f32.mrb[10].mxu1 }
 0x19e   : > { %v875_v29 = vpop.f32.mrb[11].mxu1 }
 0x1a1   : > { %v2613_v30 = vpop.f32.mrb[12].mxu1 }
 0x1a2   : > { %v889_v33 = vpop.f32.mrb[13].mxu1 }
 0x1a5   : > { %v3637_v34 = vpop.f32.mrb[14].mxu1  ;;  %v2673_v49 = vpop.f32.mrb[0].mxu0 }
 0x1a6   : > { %v3639_v41 = vpop.f32.mrb[15].mxu1  ;;  %v3641_v50 = vadd.f32 %v2673_v49, %v2569_v4  ;;  %v1340_v51 = vpop.f32.mrb[1].mxu0 }
 0x1a7   : > { %v3643_v52 = vadd.f32 %v1340_v51, %v641_v5 }
 0x1a8   : > { %v1454_v1 = vsel %vm1450_vm1, %v3641_v50, -inf }
 0x1a9   : > { %v2676_v53 = vpop.f32.mrb[2].mxu0  ;;  %v1451_v54 = vsel %vm1450_vm1, %v3643_v52, -inf }
 0x1aa   : > { %v3647_v58 = vadd.f32 %v2676_v53, %v2572_v9  ;;  %v1352_v59 = vpop.f32.mrb[3].mxu0  ;;  %1452 = vmax.xlane.f32.xlu0 %v1451_v54  ;;  %v3723_v9 = vld [vmem:[#allocation2] sm:$0xff] }
 0x1ab   : > { %v3649_v61 = vadd.f32 %v1352_v59, %v653_v10  ;;  %v3762_v59 = vld [vmem:[#allocation2 + $0x28] sm:$0xff] }
 0x1ac   : > { %v1460_v62 = vsel %vm1450_vm1, %v3647_v58, -inf }
 0x1ad   : > { %v2679_v0 = vpop.f32.mrb[4].mxu0  ;;  %1461 = vmax.xlane.f32.xlu1 %v1460_v62  ;;  %v1457_v12 = vsel %vm1450_vm1, %v3649_v61, -inf }
 0x1ae   : > { %v3655_v6 = vadd.f32 %v2679_v0, %v2575_v11  ;;  %v1364_v7 = vpop.f32.mrb[5].mxu0  ;;  %1455 = vmax.xlane.f32.xlu0 %v1454_v1  ;;  %v3768_v0 = vld [vmem:[#allocation2 + $0x30] sm:$0xff] }
 0x1af   : > { %v3657_v8 = vadd.f32 %v1364_v7, %v665_v15  ;;  %v3728_v15 = vld [vmem:[#allocation2 + $0x18] sm:$0xff] }
 0x1b0   : > { %v1466_v36 = vsel %vm1450_vm1, %v3655_v6, -inf }
 0x1b1   : > { %v2682_v13 = vpop.f32.mrb[6].mxu0  ;;  %1458 = vmax.xlane.f32.xlu1 %v1457_v12  ;;  %v1463_v14 = vsel %vm1450_vm1, %v3657_v8, -inf }
 0x1b2   : > { %v3663_v31 = vadd.f32 %v2682_v13, %v2578_v18  ;;  %v1376_v32 = vpop.f32.mrb[7].mxu0  ;;  %1464 = vmax.xlane.f32.xlu0 %v1463_v14  ;;  %v3730_v18 = vld [vmem:[#allocation2 + $0x8] sm:$0xff] }
 0x1b3   : > { %v3665_v35 = vadd.f32 %v1376_v32, %v677_v21  ;;  %v3781_v32 = vld [vmem:[#allocation2 + $0x38] sm:$0xff] }
 0x1b4   : > { %v1472_v43 = vsel %vm1450_vm1, %v3663_v31, -inf }
 0x1b5   : > { %v2685_v37 = vpop.f32.mrb[8].mxu0  ;;  %1467 = vmax.xlane.f32.xlu1 %v1466_v36  ;;  %v1469_v38 = vsel %vm1450_vm1, %v3665_v35, -inf }
 0x1b6   : > { %v3671_v39 = vadd.f32 %v2685_v37, %v2607_v22  ;;  %v1388_v40 = vpop.f32.mrb[9].mxu0  ;;  %1470 = vmax.xlane.f32.xlu0 %v1469_v38  ;;  %v3787_v37 = vld [vmem:[#allocation2 + $0x40] sm:$0xff] }
 0x1b7   : > { %v3673_v42 = vadd.f32 %v1388_v40, %v861_v25 }
 0x1b8   : > { %v1478_v56 = vsel %vm1450_vm1, %v3671_v39, -inf }
 0x1b9   : > { %v2688_v44 = vpop.f32.mrb[10].mxu0  ;;  %1473 = vmax.xlane.f32.xlu1 %v1472_v43  ;;  %v1475_v45 = vsel %vm1450_vm1, %v3673_v42, -inf }
 0x1ba   : > { %v3679_v47 = vadd.f32 %v2688_v44, %v2610_v26  ;;  %v1400_v48 = vpop.f32.mrb[11].mxu0  ;;  %1476 = vmax.xlane.f32.xlu0 %v1475_v45 }
 0x1bb   : > { %v3681_v55 = vadd.f32 %v1400_v48, %v875_v29 }
 0x1bc   : > { %v1484_v17 = vsel %vm1450_vm1, %v3679_v47, -inf }
 0x1bd   : > { %v2691_v57 = vpop.f32.mrb[12].mxu0  ;;  %1479 = vmax.xlane.f32.xlu1 %v1478_v56  ;;  %v1481_v60 = vsel %vm1450_vm1, %v3681_v55, -inf  ;;  %v3806_v56 = vld [vmem:[#allocation2 + $0x50] sm:$0xff] }
 0x1be   : > { %v3687_v16 = vadd.f32 %v2691_v57, %v2613_v30  ;;  %v1412_v23 = vpop.f32.mrb[13].mxu0  ;;  %1482 = vmax.xlane.f32.xlu0 %v1481_v60  ;;  %v3743_v30 = vld [vmem:[#allocation2 + $0x10] sm:$0xff] }
 0x1bf   : > { %v3689_v63 = vadd.f32 %v1412_v23, %v889_v33 }
 0x1c0   : > { %v1490_v3 = vsel %vm1450_vm1, %v3687_v16, -inf }
 0x1c1   : > { %v2694_v24 = vpop.f32.mrb[14].mxu0  ;;  %1485 = vmax.xlane.f32.xlu1 %v1484_v17  ;;  %v1487_v2 = vsel %vm1450_vm1, %v3689_v63, -inf }
 0x1c2   : > { %v3712_v27 = vadd.f32 %v2694_v24, %v3637_v34  ;;  %v1424_v20 = vpop.f32.mrb[15].mxu0  ;;  %1488 = vmax.xlane.f32.xlu0 %v1487_v2  ;;  %v3749_v34 = vld [vmem:[#allocation2 + $0x20] sm:$0xff]  ;;  %v3819_v2 = vld [vmem:[#allocation2 + $0x58] sm:$0xff] }
 0x1c3   : > { %v3715_v28 = vadd.f32 %v1424_v20, %v3639_v41  ;;  %v3826_v20 = vld [vmem:[#allocation2 + $0x60] sm:$0xff] }
 0x1c4   : > { %v1496_v5 = vsel %vm1450_vm1, %v3712_v27, -inf }
 0x1c5   : > { %1491 = vmax.xlane.f32.xlu1 %v1490_v3  ;;  %v1493_v4 = vsel %vm1450_vm1, %v3715_v28, -inf }
 0x1c6   : > { %1494 = vmax.xlane.f32.xlu0 %v1493_v4 }
 0x1c9   : > { %1497 = vmax.xlane.f32.xlu1 %v1496_v5 }
 0x237   : > { %v1453_v10 = vpop.xlane.xlu0 %1452 }
 0x238   : > { %v3726_v11 = vmax.f32 %v3723_v9, %v1453_v10 }
 0x23a   : > { %2082 = vst.msk [vmem:[#allocation2] sm:$0xff] %vm277_vm0, %v3726_v11  ;;  %v1462_v22 = vpop.xlane.xlu1 %1461  ;;  %1565 = vperm.xlu0 %2881, %v3726_v11  }
 0x23b   : > { %v3738_v25 = vmax.f32 %v3728_v15, %v1462_v22  ;;  %v1456_v26 = vpop.xlane.xlu0 %1455 }
 0x23c   : > { %v3741_v29 = vmax.f32 %v3730_v18, %v1456_v26  ;;  %v3839_v26 = vld [vmem:[#allocation2 + $0x68] sm:$0xff] }
 0x23d   : > { %2085 = vst.msk [vmem:[#allocation2 + $0x18] sm:$0xff] %vm277_vm0, %v3738_v25 }
 0x23e   : > { %v1516_v41 = vsub.f32 %v3730_v18, %v3741_v29  ;;  %2083 = vst.msk [vmem:[#allocation2 + $0x8] sm:$0xff] %vm277_vm0, %v3741_v29  ;;  %v1459_v49 = vpop.xlane.xlu1 %1458  ;;  %1570 = vperm.xlu1 %2882, %v3741_v29   ;;  %v4162_v18 = vsub.f32 %v3723_v9, %v3726_v11 }
 0x23f   : > { %v3757_v51 = vmax.f32 %v3743_v30, %v1459_v49  ;;  %v1465_v53 = vpop.xlane.xlu0 %1464 }
 0x240   : > { %v3760_v54 = vmax.f32 %v3749_v34, %v1465_v53  ;;  %v3847_v53 = vld [vmem:[#allocation2 + $0x70] sm:$0xff]  ;;  %v1531_v29 = vmul.f32 1.442695, %v4162_v18 }
 0x241   : > { %v1517_v62 = vsub.f32 %v3743_v30, %v3757_v51  ;;  %2084 = vst.msk [vmem:[#allocation2 + $0x10] sm:$0xff] %vm277_vm0, %v3757_v51 }
 0x242   : > { %2086 = vst.msk [vmem:[#allocation2 + $0x20] sm:$0xff] %vm277_vm0, %v3760_v54  ;;  %v1468_v7 = vpop.xlane.xlu1 %1467  ;;  %1580 = vperm.xlu1 %2882, %v3738_v25  }
 0x243   : > { %v3776_v12 = vmax.f32 %v3762_v59, %v1468_v7  ;;  %v1471_v13 = vpop.xlane.xlu0 %1470 }
 0x244   : > { %v3779_v14 = vmax.f32 %v3768_v0, %v1471_v13 }
 0x245   : > { %2087 = vst.msk [vmem:[#allocation2 + $0x28] sm:$0xff] %vm277_vm0, %v3776_v12  ;;  %v4166_v9 = vsub.f32 %v3762_v59, %v3776_v12 }
 0x246   : > { %2088 = vst.msk [vmem:[#allocation2 + $0x30] sm:$0xff] %vm277_vm0, %v3779_v14  ;;  %v1474_v40 = vpop.xlane.xlu1 %1473  ;;  %1575 = vperm.xlu1 %2882, %v3757_v51  }
 0x247   : > { %v3795_v43 = vmax.f32 %v3781_v32, %v1474_v40  ;;  %v1477_v44 = vpop.xlane.xlu0 %1476  ;;  %v1924_v40 = vld [vmem:[%s242_s25] sm:$0xf]  ;;  %v1541_v11 = vmul.f32 1.442695, %v4166_v9 }
 0x248   : > { %v3798_v45 = vmax.f32 %v3787_v37, %v1477_v44  ;;  %2795 = vmatprep.subr.msk.bf16.mxu1 %vm1949_vm2, %v1924_v40 }
 0x249   : > { %2089 = vst.msk [vmem:[#allocation2 + $0x38] sm:$0xff] %vm277_vm0, %v3795_v43 }
 0x24a   : > { %2090 = vst.msk [vmem:[#allocation2 + $0x40] sm:$0xff] %vm277_vm0, %v3798_v45  ;;  %v1480_v60 = vpop.xlane.xlu1 %1479  ;;  %1590 = vperm.xlu1 %2882, %v3776_v12  }
 0x24b   : > { %v3814_v23 = vmax.f32 %v3800_v46, %v1480_v60  ;;  %v1483_v17 = vpop.xlane.xlu0 %1482 }
 0x24c   : > { %v3817_v24 = vmax.f32 %v3806_v56, %v1483_v17  ;;  %v1951_v17 = vsel %vm1949_vm2, %v1924_v40, 0 }
 0x24d   : > { %2091 = vst.msk [vmem:[#allocation2 + $0x48] sm:$0xff] %vm277_vm0, %v3814_v23  ;;  %1610 = vperm.xlu0 %2881, %v3814_v23   ;;  %2696 = vmatpush3.bf16.msra.mxu1 %v1951_v17 }
 0x24e   : > { %2092 = vst.msk [vmem:[#allocation2 + $0x50] sm:$0xff] %vm277_vm0, %v3817_v24  ;;  %v1486_v4 = vpop.xlane.xlu1 %1485  ;;  %1585 = vperm.xlu1 %2882, %v3760_v54  }
 0x24f   : > { %v3834_v5 = vmax.f32 %v3819_v2, %v1486_v4  ;;  %v1489_v10 = vpop.xlane.xlu0 %1488 }
 0x250   : > { %v3837_v22 = vmax.f32 %v3826_v20, %v1489_v10  ;;  %v3860_v10 = vld [vmem:[#allocation2 + $0x78] sm:$0xff] }
 0x251   : > { %2093 = vst.msk [vmem:[#allocation2 + $0x58] sm:$0xff] %vm277_vm0, %v3834_v5  ;;  %1620 = vperm.xlu0 %2881, %v3834_v5  }
 0x252   : > { %2094 = vst.msk [vmem:[#allocation2 + $0x60] sm:$0xff] %vm277_vm0, %v3837_v22  ;;  %v1492_v13 = vpop.xlane.xlu1 %1491  ;;  %1600 = vperm.xlu1 %2882, %v3795_v43   ;;  %v4169_v59 = vsub.f32 %v3826_v20, %v3837_v22  ;;  %v4172_v20 = vsub.f32 %v3819_v2, %v3834_v5 }
 0x253   : > { %v3855_v44 = vmax.f32 %v3839_v26, %v1492_v13  ;;  %v1495_v60 = vpop.xlane.xlu0 %1494 }
 0x254   : > { %v3858_v4 = vmax.f32 %v3847_v53, %v1495_v60  ;;  %v1555_v12 = vmul.f32 1.442695, %v4169_v59 }
 0x255   : > { %2095 = vst.msk [vmem:[#allocation2 + $0x68] sm:$0xff] %vm277_vm0, %v3855_v44  ;;  %1630 = vperm.xlu0 %2881, %v3855_v44  }
 0x256   : > { %2096 = vst.msk [vmem:[#allocation2 + $0x70] sm:$0xff] %vm277_vm0, %v3858_v4  ;;  %v1498_v40 = vpop.xlane.xlu1 %1497  ;;  %1595 = vperm.xlu1 %2882, %v3779_v14  }
 0x257   : > { %v3873_v60 = vmax.f32 %v3860_v10, %v1498_v40 }
 0x259   : > { %2097 = vst.msk [vmem:[#allocation2 + $0x78] sm:$0xff] %vm277_vm0, %v3873_v60  ;;  %1640 = vperm.xlu0 %2881, %v3873_v60   ;;  %v4174_v2 = vsub.f32 %v3860_v10, %v3873_v60  ;;  %v1691_v60 = vld [vmem:[#allocation3] sm:$0xff] }
 0x25a   : > { %1605 = vperm.xlu1 %2882, %v3798_v45  }
 0x25b   : > { %v1561_v5 = vmul.f32 1.442695, %v4174_v2 }
 0x25e   : > { %1615 = vperm.xlu1 %2882, %v3817_v24  }
 0x262   : > { %1625 = vperm.xlu1 %2882, %v3837_v22   ;;  %v1553_v22 = vmul.f32 1.442695, %v4172_v20 }
 0x266   : > { %1635 = vperm.xlu1 %2882, %v3858_v4  }
 0x2b9   : > { %v1566_v49 = vpop.permute.xlu0 %1565 }
 0x2ba   : > { %v1643_v40 = vsub.f32 %v3643_v52, %v1566_v49 }
 0x2bc   : > { %v1659_v13 = vmul.f32 1.442695, %v1643_v40 }
 0x2bd   : > { %v1571_v19 = vpop.permute.xlu1 %1570 }
 0x2be   : > { %2883 = vpow2.f32 %v1659_v13  ;;  %v1644_v17 = vsub.f32 %v3641_v50, %v1571_v19 }
 0x2c0   : > { %v1661_v7 = vmul.f32 1.442695, %v1644_v17 }
 0x2c1   : > { %v1581_v48 = vpop.permute.xlu1 %1580 }
 0x2c2   : > { %2885 = vpow2.f32 %v1661_v7  ;;  %v1646_v3 = vsub.f32 %v3647_v58, %v1581_v48 }
 0x2c4   : > { %v1665_v36 = vmul.f32 1.442695, %v1646_v3 }
 0x2c5   : > { %v1576_v57 = vpop.permute.xlu1 %1575 }
 0x2c6   : > { %2887 = vpow2.f32 %v1665_v36  ;;  %v1645_v33 = vsub.f32 %v3649_v61, %v1576_v57 }
 0x2c8   : > { %v2884_v38 = vpop.eup %2883  ;;  %v1663_v21 = vmul.f32 1.442695, %v1645_v33 }
 0x2c9   : > { %v1591_v1 = vpop.permute.xlu1 %1590  ;;  %v1723_v52 = vsel %vm1450_vm1, %v2884_v38, 0.0 }
 0x2ca   : > { %2889 = vpow2.f32 %v1663_v21  ;;  %v1648_v49 = vsub.f32 %v3655_v6, %v1591_v1  ;;  %1724 = vadd.xlane.f32.xlu1 %v1723_v52 }
 0x2cc   : > { %v2886_v50 = vpop.eup %2885  ;;  %v1669_v19 = vmul.f32 1.442695, %v1648_v49  ;;  %v1611_v13 = vpop.permute.xlu0 %1610 }
 0x2cd   : > { %v1586_v7 = vpop.permute.xlu1 %1585  ;;  %v1726_v58 = vsel %vm1450_vm1, %v2886_v50, 0.0  ;;  %v1916_v48 = vpack.c.bf16 %v2886_v50, %v2884_v38  ;;  %v1652_v33 = vsub.f32 %v3671_v39, %v1611_v13 }
 0x2ce   : > { %2891 = vpow2.f32 %v1669_v19  ;;  %v1647_v36 = vsub.f32 %v3657_v8, %v1586_v7  ;;  %1727 = vadd.xlane.f32.xlu0 %v1726_v58 }
 0x2cf   : > { %2697 = vmatprep.mubr.msk.bf16.mxu1 %vm1450_vm1, %v1916_v48  ;;  %v1677_v38 = vmul.f32 1.442695, %v1652_v33 }
 0x2d0   : > { %v2888_v61 = vpop.eup %2887  ;;  %v1667_v21 = vmul.f32 1.442695, %v1647_v36  ;;  %v1621_v57 = vpop.permute.xlu0 %1620 }
 0x2d1   : > { %v1601_v6 = vpop.permute.xlu1 %1600  ;;  %v1732_v1 = vsel %vm1450_vm1, %v2888_v61, 0.0  ;;  %v1654_v40 = vsub.f32 %v3679_v47, %v1621_v57 }
 0x2d2   : > { %2893 = vpow2.f32 %v1667_v21  ;;  %v1650_v3 = vsub.f32 %v3663_v31, %v1601_v6  ;;  %1733 = vadd.xlane.f32.xlu1 %v1732_v1 }
 0x2d3   : > { %v1681_v31 = vmul.f32 1.442695, %v1654_v40 }
 0x2d4   : > { %v2890_v17 = vpop.eup %2889  ;;  %v1673_v8 = vmul.f32 1.442695, %v1650_v3  ;;  %v1631_v52 = vpop.permute.xlu0 %1630 }
 0x2d5   : > { %v1917_v49 = vpack.c.bf16 %v2888_v61, %v2890_v17  ;;  %v1596_v50 = vpop.permute.xlu1 %1595  ;;  %v1729_v19 = vsel %vm1450_vm1, %v2890_v17, 0.0  ;;  %v1656_v7 = vsub.f32 %v3687_v16, %v1631_v52 }
 0x2d6   : > { %2895 = vpow2.f32 %v1673_v8  ;;  %v1649_v39 = vsub.f32 %v3665_v35, %v1596_v50  ;;  %1730 = vadd.xlane.f32.xlu0 %v1729_v19 }
 0x2d7   : > { %2698 = vmatmul.mubr.msk.bf16.vlgmr.msra.gmra.mrb[16].mxu1 %vm1450_vm1, %v1917_v49  ;;  %2897 = vpow2.f32 %v1677_v38  ;;  %v1685_v35 = vmul.f32 1.442695, %v1656_v7 }
 0x2d8   : > { %v2892_v13 = vpop.eup %2891  ;;  %v1671_v58 = vmul.f32 1.442695, %v1649_v39  ;;  %v1641_v48 = vpop.permute.xlu0 %1640 }
 0x2d9   : > { %v1606_v47 = vpop.permute.xlu1 %1605  ;;  %v1738_v36 = vsel %vm1450_vm1, %v2892_v13, 0.0  ;;  %v1658_v21 = vsub.f32 %v3712_v27, %v1641_v48 }
 0x2da   : > { %2899 = vpow2.f32 %v1671_v58  ;;  %v1651_v61 = vsub.f32 %v3673_v42, %v1606_v47  ;;  %1739 = vadd.xlane.f32.xlu1 %v1738_v36 }
 0x2db   : > { %2901 = vpow2.f32 %v1681_v31  ;;  %v1689_v42 = vmul.f32 1.442695, %v1658_v21 }
 0x2dc   : > { %v2894_v33 = vpop.eup %2893  ;;  %v1675_v57 = vmul.f32 1.442695, %v1651_v61 }
 0x2dd   : > { %v1616_v6 = vpop.permute.xlu1 %1615  ;;  %v1735_v1 = vsel %vm1450_vm1, %v2894_v33, 0.0  ;;  %v1918_v3 = vpack.c.bf16 %v2892_v13, %v2894_v33 }
 0x2de   : > { %2903 = vpow2.f32 %v1675_v57  ;;  %v1653_v16 = vsub.f32 %v3681_v55, %v1616_v6  ;;  %1736 = vadd.xlane.f32.xlu0 %v1735_v1 }
 0x2df   : > { %2701 = vmatprep.mubr.msk.bf16.mxu1 %vm1450_vm1, %v1918_v3  ;;  %2905 = vpow2.f32 %v1685_v35 }
 0x2e0   : > { %v2896_v17 = vpop.eup %2895  ;;  %v1679_v38 = vmul.f32 1.442695, %v1653_v16 }
 0x2e1   : > { %v1626_v40 = vpop.permute.xlu1 %1625  ;;  %v1744_v8 = vsel %vm1450_vm1, %v2896_v17, 0.0  ;;  %v2898_v52 = vpop.eup %2897 }
 0x2e2   : > { %2907 = vpow2.f32 %v1679_v38  ;;  %v1655_v27 = vsub.f32 %v3689_v63, %v1626_v40  ;;  %1745 = vadd.xlane.f32.xlu1 %v1744_v8  ;;  %v1750_v39 = vsel %vm1450_vm1, %v2898_v52, 0.0  ;;  %v1535_v8 = vmul.f32 1.442695, %v1517_v62 }
 0x2e3   : > { %2909 = vpow2.f32 %v1689_v42  ;;  %v1533_v42 = vmul.f32 1.442695, %v1516_v41  ;;  %v4163_v41 = vsub.f32 %v3768_v0, %v3779_v14  ;;  %v4168_v0 = vsub.f32 %v3781_v32, %v3795_v43 }
 0x2e4   : > { %v2900_v49 = vpop.eup %2899  ;;  %v1683_v50 = vmul.f32 1.442695, %v1655_v27  ;;  %v4171_v43 = vsub.f32 %v3847_v53, %v3858_v4 }
 0x2e5   : > { %v1636_v19 = vpop.permute.xlu1 %1635  ;;  %v1741_v55 = vsel %vm1450_vm1, %v2900_v49, 0.0  ;;  %v1919_v13 = vpack.c.bf16 %v2896_v17, %v2900_v49  ;;  %v2902_v31 = vpop.eup %2901  ;;  %v1543_v49 = vmul.f32 1.442695, %v4163_v41  ;;  %v1545_v14 = vmul.f32 1.442695, %v4168_v0 }
 0x2e6   : > { %2911 = vpow2.f32 %v1683_v50  ;;  %v1657_v7 = vsub.f32 %v3715_v28, %v1636_v19  ;;  %1742 = vadd.xlane.f32.xlu0 %v1741_v55  ;;  %1751 = vadd.xlane.f32.xlu1 %v1750_v39  ;;  %v1756_v47 = vsel %vm1450_vm1, %v2902_v31, 0.0  ;;  %v4164_v50 = vsub.f32 %v3728_v15, %v3738_v25 }
 0x2e7   : > { %2702 = vmatmul.mubr.msk.bf16.gmra.mrb[20].mxu1 %vm1450_vm1, %v1919_v13  ;;  %v4167_v15 = vsub.f32 %v3806_v56, %v3817_v24  ;;  %v4170_v56 = vsub.f32 %v3800_v46, %v3814_v23  ;;  %v1559_v55 = vmul.f32 1.442695, %v4171_v43  ;;  %v4173_v23 = vsub.f32 %v3839_v26, %v3855_v44 }
 0x2e8   : > { %v2904_v58 = vpop.eup %2903  ;;  %v1687_v63 = vmul.f32 1.442695, %v1657_v7  ;;  %v1537_v30 = vmul.f32 1.442695, %v4164_v50  ;;  %v1698_v50 = vld [vmem:[#allocation3 + $0x38] sm:$0xff] }
 0x2e9   : > { %v1747_v48 = vsel %vm1450_vm1, %v2904_v58, 0.0  ;;  %v1920_v36 = vpack.c.bf16 %v2898_v52, %v2904_v58  ;;  %v2906_v61 = vpop.eup %2905  ;;  %v4161_v52 = vsub.f32 %v3749_v34, %v3760_v54  ;;  %v4165_v34 = vsub.f32 %v3787_v37, %v3798_v45 }
 0x2ea   : > { %2913 = vpow2.f32 %v1687_v63  ;;  %1748 = vadd.xlane.f32.xlu0 %v1747_v48  ;;  %1757 = vadd.xlane.f32.xlu1 %v1756_v47  ;;  %v1762_v35 = vsel %vm1450_vm1, %v2906_v61, 0.0  ;;  %v1551_v25 = vmul.f32 1.442695, %v4167_v15  ;;  %v1549_v24 = vmul.f32 1.442695, %v4170_v56  ;;  %v1692_v47 = vld [vmem:[#allocation3 + $0x8] sm:$0xff] }
 0x2eb   : > { %2705 = vmatprep.mubr.msk.bf16.mxu1 %vm1450_vm1, %v1920_v36  ;;  %2915 = vpow2.f32 %v1533_v42  ;;  %v1539_v27 = vmul.f32 1.442695, %v4161_v52  ;;  %v1547_v54 = vmul.f32 1.442695, %v4165_v34  ;;  %v1557_v13 = vmul.f32 1.442695, %v4173_v23 }
 0x2ec   : > { %v2908_v33 = vpop.eup %2907  ;;  %2917 = vpow2.f32 %v1535_v8  ;;  %v1696_v42 = vld [vmem:[#allocation3 + $0x28] sm:$0xff]  ;;  %v1699_v56 = vld [vmem:[#allocation3 + $0x40] sm:$0xff] }
 0x2ed   : > { %v1753_v28 = vsel %vm1450_vm1, %v2908_v33, 0.0  ;;  %v1921_v21 = vpack.c.bf16 %v2902_v31, %v2908_v33  ;;  %v2910_v57 = vpop.eup %2909  ;;  %2919 = vpow2.f32 %v1539_v27  ;;  %v1695_v27 = vld [vmem:[#allocation3 + $0x20] sm:$0xff]  ;;  %v1704_v23 = vld [vmem:[#allocation3 + $0x68] sm:$0xff] }
 0x2ee   : > { %1754 = vadd.xlane.f32.xlu0 %v1753_v28  ;;  %1763 = vadd.xlane.f32.xlu1 %v1762_v35  ;;  %v1768_v3 = vsel %vm1450_vm1, %v2910_v57, 0.0  ;;  %2921 = vpow2.f32 %v1531_v29  ;;  %v1694_v28 = vld [vmem:[#allocation3 + $0x18] sm:$0xff] }
 0x2ef   : > { %2706 = vmatmul.mubr.msk.bf16.gmra.mrb[24].mxu1 %vm1450_vm1, %v1921_v21  ;;  %2923 = vpow2.f32 %v1543_v49 }
 0x2f0   : > { %v2912_v6 = vpop.eup %2911  ;;  %2925 = vpow2.f32 %v1537_v30 }
 0x2f1   : > { %v1759_v1 = vsel %vm1450_vm1, %v2912_v6, 0.0  ;;  %v1922_v16 = vpack.c.bf16 %v2906_v61, %v2912_v6  ;;  %2927 = vpow2.f32 %v1547_v54  ;;  %v1693_v6 = vld [vmem:[#allocation3 + $0x10] sm:$0xff] }
 0x2f2   : > { %1760 = vadd.xlane.f32.xlu0 %v1759_v1  ;;  %1769 = vadd.xlane.f32.xlu1 %v1768_v3  ;;  %2929 = vpow2.f32 %v1541_v11  ;;  %v1700_v11 = vld [vmem:[#allocation3 + $0x48] sm:$0xff] }
 0x2f3   : > { %2709 = vmatprep.mubr.msk.bf16.mxu1 %vm1450_vm1, %v1922_v16  ;;  %2931 = vpow2.f32 %v1551_v25 }
 0x2f4   : > { %v2914_v17 = vpop.eup %2913  ;;  %2933 = vpow2.f32 %v1545_v14 }
 0x2f5   : > { %v1765_v38 = vsel %vm1450_vm1, %v2914_v17, 0.0  ;;  %v1923_v40 = vpack.c.bf16 %v2910_v57, %v2914_v17  ;;  %v2916_v51 = vpop.eup %2915  ;;  %2935 = vpow2.f32 %v1555_v12  ;;  %v1702_v12 = vld [vmem:[#allocation3 + $0x58] sm:$0xff] }
 0x2f6   : > { %1766 = vadd.xlane.f32.xlu0 %v1765_v38  ;;  %v3948_v62 = vpop.eup %2917  ;;  %2937 = vpow2.f32 %v1549_v24  ;;  %v1708_v61 = vmul.f32 %v2916_v51, %v1692_v47  ;;  %v1703_v47 = vld [vmem:[#allocation3 + $0x60] sm:$0xff] }
 0x2f7   : > { %2710 = vmatmul.mubr.msk.bf16.gmra.mrb[28].mxu1 %vm1450_vm1, %v1923_v40  ;;  %v3957_v37 = vpop.eup %2919  ;;  %2939 = vpow2.f32 %v1559_v55  ;;  %v1709_v16 = vmul.f32 %v3948_v62, %v1693_v6  ;;  %v1705_v6 = vld [vmem:[#allocation3 + $0x70] sm:$0xff] }
 0x2f8   : > { %v2922_v45 = vpop.eup %2921  ;;  %2941 = vpow2.f32 %v1553_v22  ;;  %v1711_v41 = vmul.f32 %v3957_v37, %v1695_v27 }
 0x2f9   : > { %v3966_v19 = vpop.eup %2923  ;;  %2943 = vpow2.f32 %v1557_v13  ;;  %v1707_v63 = vmul.f32 %v2922_v45, %v1691_v60  ;;  %v1701_v13 = vld [vmem:[#allocation3 + $0x50] sm:$0xff] }
 0x2fa   : > { %v2926_v32 = vpop.eup %2925  ;;  %2945 = vpow2.f32 %v1561_v5 }
 0x2fb   : > { %v3975_v39 = vpop.eup %2927  ;;  %v1710_v21 = vmul.f32 %v2926_v32, %v1694_v28 }
 0x2fc   : > { %v2930_v46 = vpop.eup %2929  ;;  %v1715_v22 = vmul.f32 %v3975_v39, %v1699_v56 }
 0x2fd   : > { %v3981_v53 = vpop.eup %2931  ;;  %v1712_v8 = vmul.f32 %v2930_v46, %v1696_v42 }
 0x2fe   : > { %v2934_v4 = vpop.eup %2933 }
 0x2ff   : > { %v3987_v31 = vpop.eup %2935  ;;  %v1714_v54 = vmul.f32 %v2934_v4, %v1698_v50 }
 0x300   : > { %v2938_v7 = vpop.eup %2937 }
 0x301   : > { %v3990_v26 = vpop.eup %2939  ;;  %v1716_v14 = vmul.f32 %v2938_v7, %v1700_v11 }
 0x302   : > { %v3992_v44 = vpop.eup %2941 }
 0x303   : > { %1827 = vperm.xlu1 %2882, %v2916_v51   ;;  %v3996_v58 = vpop.eup %2943  ;;  %v1718_v20 = vmul.f32 %v3992_v44, %v1702_v12 }
 0x304   : > { %v3999_v10 = vpop.eup %2945  ;;  %v1720_v60 = vmul.f32 %v3996_v58, %v1704_v23 }
 0x307   : > { %1832 = vperm.xlu1 %2882, %v3948_v62   ;;  %v1697_v62 = vld [vmem:[#allocation3 + $0x30] sm:$0xff] }
 0x30b   : > { %1842 = vperm.xlu1 %2882, %v3957_v37   ;;  %v1713_v37 = vmul.f32 %v3966_v19, %v1697_v62 }
 0x30c   : > { %1822 = vperm.xlu0 %2881, %v2922_v45  }
 0x30f   : > { %1852 = vperm.xlu1 %2882, %v3966_v19  }
 0x310   : > { %1837 = vperm.xlu0 %2881, %v2926_v32  }
 0x313   : > { %1862 = vperm.xlu1 %2882, %v3975_v39  }
 0x314   : > { %1847 = vperm.xlu0 %2881, %v2930_v46  }
 0x317   : > { %1872 = vperm.xlu1 %2882, %v3981_v53  }
 0x318   : > { %1857 = vperm.xlu0 %2881, %v2934_v4  }
 0x31b   : > { %1882 = vperm.xlu1 %2882, %v3987_v31  }
 0x31c   : > { %1867 = vperm.xlu0 %2881, %v2938_v7  }
 0x31f   : > { %1892 = vperm.xlu1 %2882, %v3990_v26  }
 0x320   : > { %1877 = vperm.xlu0 %2881, %v3992_v44   ;;  %v1717_v44 = vmul.f32 %v3981_v53, %v1701_v13 }
 0x324   : > { %1887 = vperm.xlu0 %2881, %v3996_v58   ;;  %v1719_v58 = vmul.f32 %v3987_v31, %v1703_v47 }
 0x328   : > { %1897 = vperm.xlu0 %2881, %v3999_v10  }
 0x357   : > { %v1725_v48 = vpop.xlane.xlu1 %1724 }
 0x358   : > { %v1771_v36 = vadd.f32 %v1725_v48, %v1707_v63  ;;  %v1706_v48 = vld [vmem:[#allocation3 + $0x78] sm:$0xff] }
 0x35a   : > { %1788 = vst.msk [vmem:[#allocation3] sm:$0xff] %vm277_vm0, %v1771_v36 }
 0x35b   : > { %v1728_v33 = vpop.xlane.xlu0 %1727 }
 0x35c   : > { %v1772_v35 = vadd.f32 %v1728_v33, %v1708_v61 }
 0x35e   : > { %1789 = vst.msk [vmem:[#allocation3 + $0x8] sm:$0xff] %vm277_vm0, %v1772_v35 }
 0x35f   : > { %v1734_v57 = vpop.xlane.xlu1 %1733 }
 0x360   : > { %v1774_v1 = vadd.f32 %v1734_v57, %v1710_v21  ;;  %v1722_v21 = vmul.f32 %v3999_v10, %v1706_v48 }
 0x361   : > { %v2117_v3 = vld [vmem:[#allocation3] sm:$0xff] }
 0x362   : > { %1791 = vst.msk [vmem:[#allocation3 + $0x18] sm:$0xff] %vm277_vm0, %v1774_v1  ;;  %2947 = vrcp.f32 %v2117_v3 }
 0x363   : > { %v1731_v17 = vpop.xlane.xlu0 %1730 }
 0x364   : > { %v1773_v38 = vadd.f32 %v1731_v17, %v1709_v16 }
 0x365   : > { %v2118_v40 = vld [vmem:[#allocation3 + $0x8] sm:$0xff] }
 0x366   : > { %1790 = vst.msk [vmem:[#allocation3 + $0x10] sm:$0xff] %vm277_vm0, %v1773_v38  ;;  %2949 = vrcp.f32 %v2118_v40  ;;  %v1721_v38 = vmul.f32 %v3990_v26, %v1705_v6 }
 0x367   : > { %v1740_v52 = vpop.xlane.xlu1 %1739 }
 0x368   : > { %v1776_v18 = vadd.f32 %v1740_v52, %v1712_v8 }
 0x369   : > { %v2120_v29 = vld [vmem:[#allocation3 + $0x18] sm:$0xff] }
 0x36a   : > { %1793 = vst.msk [vmem:[#allocation3 + $0x28] sm:$0xff] %vm277_vm0, %v1776_v18  ;;  %2951 = vrcp.f32 %v2120_v29 }
 0x36b   : > { %v1737_v49 = vpop.xlane.xlu0 %1736 }
 0x36c   : > { %v2948_v30 = vpop.eup %2947  ;;  %v1775_v51 = vadd.f32 %v1737_v49, %v1711_v41 }
 0x36d   : > { %2151 = vperm.xlu1 %2882, %v2948_v30   ;;  %v2119_v34 = vld [vmem:[#allocation3 + $0x10] sm:$0xff] }
 0x36e   : > { %1792 = vst.msk [vmem:[#allocation3 + $0x20] sm:$0xff] %vm277_vm0, %v1775_v51  ;;  %2953 = vrcp.f32 %v2119_v34 }
 0x36f   : > { %v1746_v9 = vpop.xlane.xlu1 %1745 }
 0x370   : > { %v2950_v15 = vpop.eup %2949  ;;  %v1778_v25 = vadd.f32 %v1746_v9, %v1714_v54 }
 0x371   : > { %2156 = vperm.xlu0 %2881, %v2950_v15   ;;  %v2122_v0 = vld [vmem:[#allocation3 + $0x28] sm:$0xff] }
 0x372   : > { %1795 = vst.msk [vmem:[#allocation3 + $0x38] sm:$0xff] %vm277_vm0, %v1778_v25  ;;  %2955 = vrcp.f32 %v2122_v0 }
 0x373   : > { %v1752_v45 = vpop.xlane.xlu1 %1751  ;;  %v1743_v59 = vpop.xlane.xlu0 %1742 }
 0x374   : > { %v2952_v24 = vpop.eup %2951  ;;  %v1780_v32 = vadd.f32 %v1752_v45, %v1716_v14  ;;  %v1777_v43 = vadd.f32 %v1743_v59, %v1713_v37 }
 0x375   : > { %2166 = vperm.xlu0 %2881, %v2952_v24   ;;  %v2121_v55 = vld [vmem:[#allocation3 + $0x20] sm:$0xff] }
 0x376   : > { %1797 = vst.msk [vmem:[#allocation3 + $0x48] sm:$0xff] %vm277_vm0, %v1780_v32  ;;  %1794 = vst.msk [vmem:[#allocation3 + $0x30] sm:$0xff] %vm277_vm0, %v1777_v43  ;;  %2957 = vrcp.f32 %v2121_v55 }
 0x377   : > { %v1758_v19 = vpop.xlane.xlu1 %1757  ;;  %v1749_v46 = vpop.xlane.xlu0 %1748 }
 0x378   : > { %v2954_v4 = vpop.eup %2953  ;;  %v1782_v2 = vadd.f32 %v1758_v19, %v1718_v20  ;;  %v1779_v5 = vadd.f32 %v1749_v46, %v1715_v22 }
 0x379   : > { %2161 = vperm.xlu1 %2882, %v2954_v4   ;;  %v2124_v7 = vld [vmem:[#allocation3 + $0x38] sm:$0xff] }
 0x37a   : > { %1799 = vst.msk [vmem:[#allocation3 + $0x58] sm:$0xff] %vm277_vm0, %v1782_v2  ;;  %1796 = vst.msk [vmem:[#allocation3 + $0x40] sm:$0xff] %vm277_vm0, %v1779_v5  ;;  %2959 = vrcp.f32 %v2124_v7 }
 0x37b   : > { %v1764_v39 = vpop.xlane.xlu1 %1763  ;;  %v1755_v63 = vpop.xlane.xlu0 %1754 }
 0x37c   : > { %v2956_v36 = vpop.eup %2955  ;;  %v1784_v61 = vadd.f32 %v1764_v39, %v1720_v60  ;;  %v1781_v33 = vadd.f32 %v1755_v63, %v1717_v44 }
 0x37d   : > { %2176 = vperm.xlu0 %2881, %v2956_v36   ;;  %v2126_v28 = vld [vmem:[#allocation3 + $0x48] sm:$0xff]  ;;  %v2123_v35 = vld [vmem:[#allocation3 + $0x30] sm:$0xff] }
 0x37e   : > { %1801 = vst.msk [vmem:[#allocation3 + $0x68] sm:$0xff] %vm277_vm0, %v1784_v61  ;;  %1798 = vst.msk [vmem:[#allocation3 + $0x50] sm:$0xff] %vm277_vm0, %v1781_v33  ;;  %2961 = vrcp.f32 %v2126_v28 }
 0x37f   : > { %v1770_v53 = vpop.xlane.xlu1 %1769  ;;  %v1761_v57 = vpop.xlane.xlu0 %1760  ;;  %2963 = vrcp.f32 %v2123_v35 }
 0x380   : > { %v2958_v1 = vpop.eup %2957  ;;  %v1786_v3 = vadd.f32 %v1770_v53, %v1722_v21  ;;  %v1783_v16 = vadd.f32 %v1761_v57, %v1719_v58 }
 0x381   : > { %2171 = vperm.xlu1 %2882, %v2958_v1   ;;  %v2128_v17 = vld [vmem:[#allocation3 + $0x58] sm:$0xff]  ;;  %v2125_v42 = vld [vmem:[#allocation3 + $0x40] sm:$0xff] }
 0x382   : > { %1803 = vst.msk [vmem:[#allocation3 + $0x78] sm:$0xff] %vm277_vm0, %v1786_v3  ;;  %1800 = vst.msk [vmem:[#allocation3 + $0x60] sm:$0xff] %vm277_vm0, %v1783_v16  ;;  %2965 = vrcp.f32 %v2128_v17 }
 0x383   : > { %v1767_v10 = vpop.xlane.xlu0 %1766  ;;  %2967 = vrcp.f32 %v2125_v42  ;;  %v1828_v59 = vpop.permute.xlu1 %1827 }
 0x384   : > { %v2960_v31 = vpop.eup %2959  ;;  %v1785_v40 = vadd.f32 %v1767_v10, %v1721_v38  ;;  %v1901_v35 = vmul.f32 0.0, %v1828_v59 }
 0x385   : > { %2186 = vperm.xlu0 %2881, %v2960_v31   ;;  %v2130_v8 = vld [vmem:[#allocation3 + $0x68] sm:$0xff]  ;;  %v2127_v52 = vld [vmem:[#allocation3 + $0x50] sm:$0xff] }
 0x386   : > { %1802 = vst.msk [vmem:[#allocation3 + $0x70] sm:$0xff] %vm277_vm0, %v1785_v40  ;;  %2969 = vrcp.f32 %v2130_v8 }
 0x387   : > { %2971 = vrcp.f32 %v2127_v52  ;;  %v1833_v32 = vpop.permute.xlu1 %1832 }
 0x388   : > { %v2962_v27 = vpop.eup %2961  ;;  %v1902_v16 = vmul.f32 0.0, %v1833_v32 }
 0x389   : > { %v2964_v18 = vpop.eup %2963  ;;  %2196 = vperm.xlu0 %2881, %v2962_v27   ;;  %v2132_v29 = vld [vmem:[#allocation3 + $0x78] sm:$0xff]  ;;  %v2129_v41 = vld [vmem:[#allocation3 + $0x60] sm:$0xff] }
 0x38a   : > { %2181 = vperm.xlu1 %2882, %v2964_v18   ;;  %2973 = vrcp.f32 %v2132_v29 }
 0x38b   : > { %2975 = vrcp.f32 %v2129_v41  ;;  %v1823_v12 = vpop.permute.xlu0 %1822  ;;  %v1843_v22 = vpop.permute.xlu1 %1842 }
 0x38c   : > { %v2966_v26 = vpop.eup %2965  ;;  %v1900_v36 = vmul.f32 0.0, %v1823_v12  ;;  %v1904_v52 = vmul.f32 0.0, %v1843_v22 }
 0x38d   : > { %v2968_v49 = vpop.eup %2967  ;;  %2206 = vperm.xlu0 %2881, %v2966_v26   ;;  %v2131_v50 = vld [vmem:[#allocation3 + $0x70] sm:$0xff] }
 0x38e   : > { %2191 = vperm.xlu1 %2882, %v2968_v49   ;;  %2977 = vrcp.f32 %v2131_v50 }
 0x38f   : > { %v1838_v20 = vpop.permute.xlu0 %1837  ;;  %v1853_v2 = vpop.permute.xlu1 %1852 }
 0x390   : > { %v2970_v30 = vpop.eup %2969  ;;  %v1903_v57 = vmul.f32 0.0, %v1838_v20 }
 0x391   : > { %v2972_v51 = vpop.eup %2971  ;;  %2216 = vperm.xlu0 %2881, %v2970_v30  }
 0x392   : > { %2201 = vperm.xlu1 %2882, %v2972_v51  }
 0x393   : > { %v1848_v4 = vpop.permute.xlu0 %1847  ;;  %v1863_v7 = vpop.permute.xlu1 %1862 }
 0x394   : > { %v2974_v34 = vpop.eup %2973  ;;  %v1905_v10 = vmul.f32 0.0, %v1848_v4 }
 0x395   : > { %v2976_v54 = vpop.eup %2975  ;;  %2226 = vperm.xlu0 %2881, %v2974_v34   ;;  %v1906_v34 = vmul.f32 0.0, %v1853_v2 }
 0x396   : > { %2211 = vperm.xlu1 %2882, %v2976_v54  }
 0x397   : > { %v1858_v5 = vpop.permute.xlu0 %1857  ;;  %v1873_v44 = vpop.permute.xlu1 %1872 }
 0x398   : > { %v2978_v9 = vpop.eup %2977  ;;  %v1907_v41 = vmul.f32 0.0, %v1858_v5 }
 0x39a   : > { %2221 = vperm.xlu1 %2882, %v2978_v9  }
 0x39b   : > { %v1868_v60 = vpop.permute.xlu0 %1867  ;;  %v4044_v63 = vpop.permute.xlu1 %1882 }
 0x39c   : > { %v1909_v30 = vmul.f32 0.0, %v1868_v60  ;;  %v1912_v60 = vmul.f32 0.0, %v4044_v63 }
 0x39f   : > { %v1878_v39 = vpop.permute.xlu0 %1877  ;;  %v4046_v47 = vpop.permute.xlu1 %1892 }
 0x3a3   : > { %v1888_v48 = vpop.permute.xlu0 %1887 }
 0x3a4   : > { %v1913_v32 = vmul.f32 0.0, %v1888_v48 }
 0x3a7   : > { %v1898_v33 = vpop.permute.xlu0 %1897 }
 0x3a8   : > { %v1915_v5 = vmul.f32 0.0, %v1898_v33 }
 0x3aa   : > { %v2699_v11 = vpop.f32.mrb[16].mxu1 }
 0x3ab   : > { %v1987_v62 = vpop.f32.mrb[17].mxu1  ;;  %v2052_v42 = vadd.f32 %v2699_v11, %v1902_v16 }
 0x3ac   : > { %v2700_v15 = vpop.f32.mrb[18].mxu1  ;;  %v2050_v61 = vadd.f32 %v1987_v62, %v1900_v36  ;;  %v1911_v62 = vmul.f32 0.0, %v1878_v39 }
 0x3ad   : > { %v1990_v25 = vpop.f32.mrb[19].mxu1  ;;  %v2053_v1 = vadd.f32 %v2700_v15, %v1903_v57 }
 0x3ae   : > { %v2051_v58 = vadd.f32 %v1990_v25, %v1901_v35 }
 0x3ba   : > { %v4028_v0 = vpop.f32.mrb[20].mxu1 }
 0x3bb   : > { %v2003_v14 = vpop.f32.mrb[21].mxu1  ;;  %v2056_v9 = vadd.f32 %v4028_v0, %v1906_v34  ;;  %v1910_v0 = vmul.f32 0.0, %v1873_v44 }
 0x3bc   : > { %v2704_v37 = vpop.f32.mrb[22].mxu1  ;;  %v2054_v18 = vadd.f32 %v2003_v14, %v1904_v52  ;;  %v1908_v14 = vmul.f32 0.0, %v1863_v7 }
 0x3bd   : > { %v2006_v45 = vpop.f32.mrb[23].mxu1  ;;  %v2057_v49 = vadd.f32 %v2704_v37, %v1907_v41 }
 0x3be   : > { %v2055_v40 = vadd.f32 %v2006_v45, %v1905_v10 }
 0x3c2   : > { %v4030_v56 = vpop.f32.mrb[24].mxu1 }
 0x3c3   : > { %v4032_v24 = vpop.f32.mrb[25].mxu1  ;;  %v2060_v2 = vadd.f32 %v4030_v56, %v1910_v0 }
 0x3c4   : > { %v4034_v43 = vpop.f32.mrb[26].mxu1  ;;  %v2058_v59 = vadd.f32 %v4032_v24, %v1908_v14 }
 0x3c5   : > { %v2022_v55 = vpop.f32.mrb[27].mxu1  ;;  %v2061_v37 = vadd.f32 %v4034_v43, %v1911_v62 }
 0x3c6   : > { %v2059_v54 = vadd.f32 %v2022_v55, %v1909_v30 }
 0x3ca   : > { %v4036_v19 = vpop.f32.mrb[28].mxu1 }
 0x3cb   : > { %v4038_v46 = vpop.f32.mrb[29].mxu1 }
 0x3cc   : > { %v4040_v23 = vpop.f32.mrb[30].mxu1 }
 0x3cd   : > { %v4042_v13 = vpop.f32.mrb[31].mxu1  ;;  %v2065_v44 = vadd.f32 %v4040_v23, %v1915_v5 }
 0x3ce   : > { %v2063_v4 = vadd.f32 %v4042_v13, %v1913_v32  ;;  %v2062_v13 = vadd.f32 %v4038_v46, %v1912_v60 }
 0x3ec   : > { %v2152_v28 = vpop.permute.xlu1 %2151 }
 0x3ed   : > { %v2229_v21 = vmul.f32 %v2152_v28, %v2050_v61  ;;  %v1914_v61 = vmul.f32 0.0, %v4046_v47 }
 0x3ef   : > { %2245 = vst [vmem:[%s4049_s6] sm:$0xff] %v2229_v21  ;;  %v2064_v63 = vadd.f32 %v4036_v19, %v1914_v61 }
 0x3f0   : > { %v2157_v53 = vpop.permute.xlu0 %2156 }
 0x3f1   : > { %v2230_v6 = vmul.f32 %v2157_v53, %v2051_v58 }
 0x3f3   : > { %2246 = vst [vmem:[%s4049_s6 + $0x8] sm:$0xff] %v2230_v6 }
 0x3f4   : > { %v2167_v3 = vpop.permute.xlu0 %2166 }
 0x3f5   : > { %v2232_v17 = vmul.f32 %v2167_v3, %v2053_v1 }
 0x3f7   : > { %2248 = vst [vmem:[%s4049_s6 + $0x18] sm:$0xff] %v2232_v17 }
 0x3f8   : > { %v2162_v38 = vpop.permute.xlu1 %2161 }
 0x3f9   : > { %v2231_v31 = vmul.f32 %v2162_v38, %v2052_v42 }
 0x3fb   : > { %2247 = vst [vmem:[%s4049_s6 + $0x10] sm:$0xff] %v2231_v31 }
 0x3fc   : > { %v2177_v8 = vpop.permute.xlu0 %2176 }
 0x3fd   : > { %v2234_v27 = vmul.f32 %v2177_v8, %v2055_v40 }
 0x3ff   : > { %2250 = vst [vmem:[%s4049_s6 + $0x28] sm:$0xff] %v2234_v27 }
 0x400   : > { %v2172_v29 = vpop.permute.xlu1 %2171 }
 0x401   : > { %v2233_v26 = vmul.f32 %v2172_v29, %v2054_v18 }
 0x403   : > { %2249 = vst [vmem:[%s4049_s6 + $0x20] sm:$0xff] %v2233_v26 }
 0x404   : > { %v2187_v50 = vpop.permute.xlu0 %2186 }
 0x405   : > { %v2236_v51 = vmul.f32 %v2187_v50, %v2057_v49 }
 0x407   : > { %2252 = vst [vmem:[%s4049_s6 + $0x38] sm:$0xff] %v2236_v51 }
 0x408   : > { %v2197_v11 = vpop.permute.xlu0 %2196 }
 0x409   : > { %v2238_v15 = vmul.f32 %v2197_v11, %v2059_v54  ;;  %v2182_v25 = vpop.permute.xlu1 %2181 }
 0x40a   : > { %v2235_v45 = vmul.f32 %v2182_v25, %v2056_v9 }
 0x40b   : > { %2254 = vst [vmem:[%s4049_s6 + $0x48] sm:$0xff] %v2238_v15 }
 0x40c   : > { %2251 = vst [vmem:[%s4049_s6 + $0x30] sm:$0xff] %v2235_v45  ;;  %v2207_v12 = vpop.permute.xlu0 %2206 }
 0x40d   : > { %v2240_v55 = vmul.f32 %v2207_v12, %v2061_v37  ;;  %v2192_v20 = vpop.permute.xlu1 %2191 }
 0x40e   : > { %v2237_v22 = vmul.f32 %v2192_v20, %v2058_v59 }
 0x40f   : > { %2256 = vst [vmem:[%s4049_s6 + $0x58] sm:$0xff] %v2240_v55 }
 0x410   : > { %2253 = vst [vmem:[%s4049_s6 + $0x40] sm:$0xff] %v2237_v22  ;;  %v2217_v43 = vpop.permute.xlu0 %2216 }
 0x411   : > { %v2242_v24 = vmul.f32 %v2217_v43, %v2063_v4  ;;  %v2202_v7 = vpop.permute.xlu1 %2201 }
 0x412   : > { %v2239_v39 = vmul.f32 %v2202_v7, %v2060_v2 }
 0x413   : > { %2258 = vst [vmem:[%s4049_s6 + $0x68] sm:$0xff] %v2242_v24 }
 0x414   : > { %2255 = vst [vmem:[%s4049_s6 + $0x50] sm:$0xff] %v2239_v39  ;;  %v2227_v56 = vpop.permute.xlu0 %2226 }
 0x415   : > { %v2244_v48 = vmul.f32 %v2227_v56, %v2065_v44  ;;  %v2212_v36 = vpop.permute.xlu1 %2211 }
 0x416   : > { %v2241_v33 = vmul.f32 %v2212_v36, %v2062_v13 }
 0x417   : > { %2260 = vst [vmem:[%s4049_s6 + $0x78] sm:$0xff] %v2244_v48 }
 0x418   : > { %2257 = vst [vmem:[%s4049_s6 + $0x60] sm:$0xff] %v2241_v33 }
 0x419   : > { %v2222_v23 = vpop.permute.xlu1 %2221 }
 0x41a   : > { %v2243_v46 = vmul.f32 %v2222_v23, %v2064_v63 }
 0x41c   : > { %2259 = vst [vmem:[%s4049_s6 + $0x70] sm:$0xff] %v2243_v46 }
 0x41d   : > { %3080 = shalt.err (!%p3077_p8)
}
 0x41e   : > { %s3081_s18 = scalar_lea.hbm %s4081_s10, 2048  ;;  %s3085_s23 = scalar_lea.hbm %s4136_s3, 4096 }
 0x41f   : > { %p3082_p10 = scmp.ne.s32.totalorder %s4081_s10, %s3081_s18  ;;  %p3086_p3 = scmp.lt.u32.totalorder %s4081_s10, %s4136_s3 }
 0x420   : > { %p3087_p2 = scmp.lt.u32.totalorder %s3085_s23, %s3081_s18  ;;  %p3089_p4 = scmp.lt.u32.totalorder %s3081_s18, %s4081_s10 }
 0x421   : > { %p3083_p13 = pnand %p3082_p10, %p4175_p6 }
 0x422   : > { %p3088_p11 = por %p3087_p2, %p3086_p3 }
 0x423   : > { %p3084_p7 = pneg %p3083_p13 }
 0x424   : > { %p3090_p0 = por %p3089_p4, %p3088_p11 }
 0x426   : > { %p3091_p12 = pnand %p3090_p0, %p3084_p7 }
 0x428   : > { %3094 = shalt.err (!%p3091_p12)
}
 0x429   : > { %s3164_s25 = smov 128   ;;  %s3165_s27 = smov 8  }
 0x42a   : > { %2804 = dma.vmem_to_hbm [thread:$0]  (%p4175_p6), %s4083_s21, 2048, %s4081_s10, %s2262_s9, %s3164_s25, %s3164_s25, %s3165_s27  }
 0x42b PF: > { %s2292_s6 = sand.u32 1, %s3133_s12   ;;  %p4176_p1 = scmp.ne.s32.totalorder %s4151_s30, 0 }
 0x42c   : > { %p4177_p9 = scmp.ge.s32.totalorder %s3153_s17, 2  ;;  %s2293_s11 = scalar_lea.sflag [#allocation7], %s2292_s6 }
 0x42e   : > { %p2818_p5 = pnand %p4177_p9, %p4176_p1 }
 0x430   : > { %3128 = dma.done.wait (!%p2818_p5), %s2293_s11, 2048  }
 0x431   : > { %3130 = vsyncadd (!%p2818_p5), %s2293_s11, 4294965248  ;;  %s20_s17 = sadd.s32 1, %s3153_s17   ;;  %s4178_s28 = sld [smem:[#allocation15_spill]] }
 0x432   : > { %p17_p8 = scmp.ge.s32.totalorder %s20_s17, 4   ;;  %s4179_s12 = smov %s3137_s13 }
 0x433   : > { %s4180_s13 = smov %s3141_s14  ;;  %s4181_s14 = smov %s3234_s24 }
 0x434   : > { %s4182_s15 = smov %s3149_s16  ;;  %19 = sbr.rel (!%p17_p8) target bundleno = 9 (0x9), region = 102 }
 0x437   : > { %s4183_s16 = smov %s4178_s28 }
 0x43b   :  { %2298 = vsyncpa [#allocation6], 1 }
 0x43c   :  { %2300 = vsyncpa [#allocation6 + $0x1], 1 }
 0x43d   :  { %2301 = vsyncpa [#allocation9], 1 }
 0x43e   :  { %2303 = vsyncpa [#allocation9 + $0x1], 1 }
 0x43f   :  { %2304 = vsyncpa [#allocation7], 1 }
 0x440   :  { %2306 = vsyncpa [#allocation7 + $0x1], 1 }

</bundles_post_ra>
